<compile_context>
chip_gen: v6e
topology: v6e:2x2x1
jax: 0.10.0
libtpu: 0.0.40
codegen_flags: <defaults>
</compile_context>

<pallas_src>
import functools

import jax
import jax.numpy as jnp
from jax import lax
from jax.experimental import pallas as pl
from jax.experimental.pallas import tpu as pltpu


# ------------------------------ Pallas kernel ------------------------------

def _basic_block_kernel(x_ref, hh_ref, ww_ref, w1_ref, sh1_ref, w2_ref, sh2_ref,
                        o_ref, buf_ref, *, H, W):
    """Fused BasicBlock for one batch element.

    Layouts (all VMEM-resident):
      x_ref : (1, C, H*W)  f32   input activation (also the residual)
      hh_ref: (C, H*W)     i32   row index of every flat spatial position
      ww_ref: (C, H*W)     i32   col index of every flat spatial position
      w*_ref: (9, C, C)    bf16  3x3 weights, tap-major, BN scale folded in
      sh*_ref: (C, 1)      f32   folded BN shift
      o_ref : (1, C, H*W)  f32   output (lane-dense: H*W on lanes)
      buf_ref: (C, H*W + 2*(W+1)) f32 scratch "line buffer" for in-kernel im2col
    """
    HW = H * W
    PAD = W + 1
    C = x_ref.shape[1]

    x32 = x_ref[0]            # (C, HW) f32 — kept live in vregs for the residual
    hh = hh_ref[...]
    ww = ww_ref[...]

    # Hygiene: the two PAD-wide margins of the line buffer are never selected
    # (masks below), but zero them once anyway.
    buf_ref[...] = jnp.zeros(buf_ref.shape, buf_ref.dtype)

    def conv3x3_bn(a32, w_ref, sh_ref):
        # Stage the activation in the padded line buffer, then read the 9
        # shifted taps as statically-offset slices (in-kernel im2col).
        buf_ref[:, PAD:PAD + HW] = a32
        acc = jnp.zeros((C, HW), jnp.float32)
        for t in range(9):
            dh = t // 3 - 1
            dw = t % 3 - 1
            s = dh * W + dw
            valid = ((hh + dh >= 0) & (hh + dh < H) &
                     (ww + dw >= 0) & (ww + dw < W))
            src = buf_ref[:, PAD + s:PAD + s + HW]          # (C, HW) f32
            tap = jnp.where(valid, src, 0.0).astype(jnp.bfloat16)
            acc = acc + jnp.dot(w_ref[t], tap,              # (C,C)@(C,HW) on MXU
                                preferred_element_type=jnp.float32)
        return acc + sh_ref[...]                            # folded-BN shift

    h = jnp.maximum(conv3x3_bn(x32, w1_ref, sh1_ref), 0.0)          # conv1+bn1+relu
    out = jnp.maximum(conv3x3_bn(h, w2_ref, sh2_ref) + x32, 0.0)    # conv2+bn2+res+relu
    o_ref[0] = out.astype(o_ref.dtype)


# ------------------------------ host wrapper -------------------------------

def _fold_conv_bn_weights(w_oihw, bn_scale):
    """(Cout, Cin, 3, 3) -> (9, Cout, Cin) bf16 with BN scale folded per Cout."""
    cout, cin = w_oihw.shape[0], w_oihw.shape[1]
    w9 = jnp.transpose(w_oihw, (2, 3, 0, 1)).reshape(9, cout, cin)  # tap-major
    return (w9 * bn_scale[None, :, None]).astype(jnp.bfloat16)


@jax.jit
def basic_block_forward(x_nchw, w1, scale1, shift1, w2, scale2, shift2):
    """BasicBlock forward (stride=1, downsample=None). NCHW in / NCHW out."""
    B, C, H, W = x_nchw.shape
    HW = H * W
    PAD = W + 1

    x3 = x_nchw.reshape(B, C, HW).astype(jnp.float32)   # NCHW flattened == (C, HW) layout
    w1f = _fold_conv_bn_weights(w1, scale1)
    w2f = _fold_conv_bn_weights(w2, scale2)
    sh1 = shift1.reshape(C, 1).astype(jnp.float32)
    sh2 = shift2.reshape(C, 1).astype(jnp.float32)

    # Flat-position -> (h, w) coordinate planes for the boundary masks.
    m = jnp.arange(HW, dtype=jnp.int32)
    hh = jnp.broadcast_to(m // W, (C, HW)).astype(jnp.int32)
    ww = jnp.broadcast_to(m % W, (C, HW)).astype(jnp.int32)

    kernel = functools.partial(_basic_block_kernel, H=H, W=W)
    out = pl.pallas_call(
        kernel,
        out_shape=jax.ShapeDtypeStruct((B, C, HW), jnp.float32),
        grid=(B,),
        in_specs=[
            pl.BlockSpec((1, C, HW), lambda b: (b, 0, 0)),   # x (one batch element)
            pl.BlockSpec((C, HW), lambda b: (0, 0)),          # hh
            pl.BlockSpec((C, HW), lambda b: (0, 0)),          # ww
            pl.BlockSpec((9, C, C), lambda b: (0, 0, 0)),     # folded conv1 weights
            pl.BlockSpec((C, 1), lambda b: (0, 0)),           # shift1
            pl.BlockSpec((9, C, C), lambda b: (0, 0, 0)),     # folded conv2 weights
            pl.BlockSpec((C, 1), lambda b: (0, 0)),           # shift2
        ],
        out_specs=pl.BlockSpec((1, C, HW), lambda b: (b, 0, 0)),
        scratch_shapes=[pltpu.VMEM((C, HW + 2 * PAD), jnp.float32)],
        compiler_params=pltpu.CompilerParams(
            dimension_semantics=("parallel",)),               # 2nd TC on v7x
    )(x3, hh, ww, w1f, sh1, w2f, sh2)
    return out.reshape(B, C, H, W)


# ------------------------- pure-JAX reference (f32) -------------------------

def basic_block_reference(x, w1, scale1, shift1, w2, scale2, shift2):
    dn = ('NCHW', 'OIHW', 'NCHW')

    def conv_bn(h, w, scale, shift):
        y = lax.conv_general_dilated(h, w, window_strides=(1, 1),
                                     padding=((1, 1), (1, 1)),
                                     dimension_numbers=dn)
        return y * scale[None, :, None, None] + shift[None, :, None, None]

    h = jax.nn.relu(conv_bn(x, w1, scale1, shift1))
    return jax.nn.relu(conv_bn(h, w2, scale2, shift2) + x)


# ------------------------- synthetic parameter init -------------------------

def make_bn_affine(key, c, eps=1e-5):
    k1, k2, k3, k4 = jax.random.split(key, 4)
    gamma = 1.0 + 0.1 * jax.random.normal(k1, (c,), jnp.float32)
    beta = 0.1 * jax.random.normal(k2, (c,), jnp.float32)
    mean = 0.1 * jax.random.normal(k3, (c,), jnp.float32)
    var = jax.random.uniform(k4, (c,), jnp.float32, 0.5, 1.5)
    scale = gamma * lax.rsqrt(var + eps)
    shift = beta - mean * scale
    return scale, shift


# ---------------------------------- main -----------------------------------

if __name__ == "__main__":
    B, C, H, W = 2, 4, 16, 16

    key = jax.random.PRNGKey(0)
    kx, kw1, kw2, kb1, kb2 = jax.random.split(key, 5)

    x = jax.random.normal(kx, (B, C, H, W), dtype=jnp.float32)
    fan = 1.0 / (9.0 * C) ** 0.5
    w1 = jax.random.normal(kw1, (C, C, 3, 3), dtype=jnp.float32) * fan
    w2 = jax.random.normal(kw2, (C, C, 3, 3), dtype=jnp.float32) * fan
    scale1, shift1 = make_bn_affine(kb1, C)
    scale2, shift2 = make_bn_affine(kb2, C)

    out = basic_block_forward(x, w1, scale1, shift1, w2, scale2, shift2)
    out = jax.block_until_ready(out)
    assert out.shape == (B, C, H, W) and out.dtype == jnp.float32

    ref = jax.jit(basic_block_reference)(x, w1, scale1, shift1, w2, scale2, shift2)
    ref = jax.block_until_ready(ref)
    max_err = float(jnp.max(jnp.abs(out - ref)))
    # bf16 MXU vs f32 reference; outputs are O(1), so 1e-1 abs is a safe bound.
    assert max_err < 1e-1, f"max abs err {max_err}"

    print("KERNEL_OK")
</pallas_src>

<mosaic_0001>
module attributes {stable_mosaic.version = 11 : i64} {
  func.func @_basic_block_kernel(%arg0: i32, %arg1: memref<1x4x256xf32, #tpu.memory_space<vmem>>, %arg2: memref<4x256xi32, #tpu.memory_space<vmem>>, %arg3: memref<4x256xi32, #tpu.memory_space<vmem>>, %arg4: memref<9x4x4xbf16, #tpu.memory_space<vmem>>, %arg5: memref<4x1xf32, #tpu.memory_space<vmem>>, %arg6: memref<9x4x4xbf16, #tpu.memory_space<vmem>>, %arg7: memref<4x1xf32, #tpu.memory_space<vmem>>, %arg8: memref<1x4x256xf32, #tpu.memory_space<vmem>>, %arg9: memref<4x290xf32, #tpu.memory_space<vmem>>) attributes {dimension_semantics = [#tpu.dimension_semantics<parallel>], iteration_bounds = array<i64: 2>, scalar_prefetch = 0 : i64, scratch_operands = 1 : i64, tpu.core_type = #tpu.core_type<tc>, window_params = [{transform_indices = @transform_0, window_bounds = array<i64: 1, 4, 256>}, {pipeline_mode = #tpu.pipeline_mode<synchronous>, transform_indices = @transform_1, window_bounds = array<i64: 4, 256>}, {pipeline_mode = #tpu.pipeline_mode<synchronous>, transform_indices = @transform_2, window_bounds = array<i64: 4, 256>}, {pipeline_mode = #tpu.pipeline_mode<synchronous>, transform_indices = @transform_3, window_bounds = array<i64: 9, 4, 4>}, {pipeline_mode = #tpu.pipeline_mode<synchronous>, transform_indices = @transform_4, window_bounds = array<i64: 4, 1>}, {pipeline_mode = #tpu.pipeline_mode<synchronous>, transform_indices = @transform_5, window_bounds = array<i64: 9, 4, 4>}, {pipeline_mode = #tpu.pipeline_mode<synchronous>, transform_indices = @transform_6, window_bounds = array<i64: 4, 1>}, {transform_indices = @transform_7, window_bounds = array<i64: 1, 4, 256>}]} {
    %c0 = arith.constant 0 : index
    %c0_0 = arith.constant 0 : index
    %c0_1 = arith.constant 0 : index
    %0 = vector.load %arg1[%c0, %c0_0, %c0_1] : memref<1x4x256xf32, #tpu.memory_space<vmem>>, vector<1x4x256xf32>
    %1 = vector.shape_cast %0 : vector<1x4x256xf32> to vector<4x256xf32>
    %c0_2 = arith.constant 0 : index
    %c0_3 = arith.constant 0 : index
    %2 = vector.load %arg2[%c0_2, %c0_3] : memref<4x256xi32, #tpu.memory_space<vmem>>, vector<4x256xi32>
    %c0_4 = arith.constant 0 : index
    %c0_5 = arith.constant 0 : index
    %3 = vector.load %arg3[%c0_4, %c0_5] : memref<4x256xi32, #tpu.memory_space<vmem>>, vector<4x256xi32>
    %cst = arith.constant 0.000000e+00 : f32
    %4 = vector.broadcast %cst : f32 to vector<4x290xf32>
    %c0_6 = arith.constant 0 : index
    %c0_7 = arith.constant 0 : index
    %5 = vector.load %arg9[%c0_6, %c0_7] : memref<4x290xf32, #tpu.memory_space<vmem>>, vector<4x290xf32>
    tpu.vector_store %arg9[%c0_6, %c0_7], %4 {strides = array<i32>} : memref<4x290xf32, #tpu.memory_space<vmem>>, vector<4x290xf32>,
    %c0_8 = arith.constant 0 : index
    %c17 = arith.constant 17 : index
    %6 = vector.load %arg9[%c0_8, %c17] : memref<4x290xf32, #tpu.memory_space<vmem>>, vector<4x256xf32>
    tpu.vector_store %arg9[%c0_8, %c17], %1 {strides = array<i32>} : memref<4x290xf32, #tpu.memory_space<vmem>>, vector<4x256xf32>,
    %cst_9 = arith.constant 0.000000e+00 : f32
    %7 = vector.broadcast %cst_9 : f32 to vector<4x256xf32>
    %c-1_i32 = arith.constant -1 : i32
    %8 = vector.broadcast %c-1_i32 : i32 to vector<4x256xi32>
    %9 = arith.addi %2, %8 : vector<4x256xi32>
    %c0_i32 = arith.constant 0 : i32
    %10 = vector.broadcast %c0_i32 : i32 to vector<4x256xi32>
    %11 = arith.cmpi sge, %9, %10 : vector<4x256xi32>
    %c-1_i32_10 = arith.constant -1 : i32
    %12 = vector.broadcast %c-1_i32_10 : i32 to vector<4x256xi32>
    %13 = arith.addi %2, %12 : vector<4x256xi32>
    %c16_i32 = arith.constant 16 : i32
    %14 = vector.broadcast %c16_i32 : i32 to vector<4x256xi32>
    %15 = arith.cmpi slt, %13, %14 : vector<4x256xi32>
    %16 = arith.andi %11, %15 : vector<4x256xi1>
    %c-1_i32_11 = arith.constant -1 : i32
    %17 = vector.broadcast %c-1_i32_11 : i32 to vector<4x256xi32>
    %18 = arith.addi %3, %17 : vector<4x256xi32>
    %c0_i32_12 = arith.constant 0 : i32
    %19 = vector.broadcast %c0_i32_12 : i32 to vector<4x256xi32>
    %20 = arith.cmpi sge, %18, %19 : vector<4x256xi32>
    %21 = arith.andi %16, %20 : vector<4x256xi1>
    %c-1_i32_13 = arith.constant -1 : i32
    %22 = vector.broadcast %c-1_i32_13 : i32 to vector<4x256xi32>
    %23 = arith.addi %3, %22 : vector<4x256xi32>
    %c16_i32_14 = arith.constant 16 : i32
    %24 = vector.broadcast %c16_i32_14 : i32 to vector<4x256xi32>
    %25 = arith.cmpi slt, %23, %24 : vector<4x256xi32>
    %26 = arith.andi %21, %25 : vector<4x256xi1>
    %c0_15 = arith.constant 0 : index
    %c0_16 = arith.constant 0 : index
    %27 = vector.load %arg9[%c0_15, %c0_16] : memref<4x290xf32, #tpu.memory_space<vmem>>, vector<4x256xf32>
    %cst_17 = arith.constant 0.000000e+00 : f32
    %28 = vector.broadcast %cst_17 : f32 to vector<4x256xf32>
    %29 = arith.select %26, %27, %28 : vector<4x256xi1>, vector<4x256xf32>
    %30 = arith.truncf %29 : vector<4x256xf32> to vector<4x256xbf16>
    %c0_18 = arith.constant 0 : index
    %c0_19 = arith.constant 0 : index
    %c0_20 = arith.constant 0 : index
    %31 = vector.load %arg4[%c0_18, %c0_19, %c0_20] : memref<9x4x4xbf16, #tpu.memory_space<vmem>>, vector<1x4x4xbf16>
    %32 = vector.shape_cast %31 : vector<1x4x4xbf16> to vector<4x4xbf16>
    %cst_21 = arith.constant dense<0.000000e+00> : vector<4x256xf32>
    %33 = tpu.matmul %32, %30, %cst_21 {dimension_numbers = #tpu.dot_dimension_numbers<[1], [0], [0], [1], [0, 0, 1, 1], [], []>} : vector<4x4xbf16>, vector<4x256xbf16>, vector<4x256xf32> -> vector<4x256xf32>
    %34 = arith.addf %7, %33 : vector<4x256xf32>
    %c-1_i32_22 = arith.constant -1 : i32
    %35 = vector.broadcast %c-1_i32_22 : i32 to vector<4x256xi32>
    %36 = arith.addi %2, %35 : vector<4x256xi32>
    %c0_i32_23 = arith.constant 0 : i32
    %37 = vector.broadcast %c0_i32_23 : i32 to vector<4x256xi32>
    %38 = arith.cmpi sge, %36, %37 : vector<4x256xi32>
    %c-1_i32_24 = arith.constant -1 : i32
    %39 = vector.broadcast %c-1_i32_24 : i32 to vector<4x256xi32>
    %40 = arith.addi %2, %39 : vector<4x256xi32>
    %c16_i32_25 = arith.constant 16 : i32
    %41 = vector.broadcast %c16_i32_25 : i32 to vector<4x256xi32>
    %42 = arith.cmpi slt, %40, %41 : vector<4x256xi32>
    %43 = arith.andi %38, %42 : vector<4x256xi1>
    %c0_i32_26 = arith.constant 0 : i32
    %44 = vector.broadcast %c0_i32_26 : i32 to vector<4x256xi32>
    %45 = arith.addi %3, %44 : vector<4x256xi32>
    %c0_i32_27 = arith.constant 0 : i32
    %46 = vector.broadcast %c0_i32_27 : i32 to vector<4x256xi32>
    %47 = arith.cmpi sge, %45, %46 : vector<4x256xi32>
    %48 = arith.andi %43, %47 : vector<4x256xi1>
    %c0_i32_28 = arith.constant 0 : i32
    %49 = vector.broadcast %c0_i32_28 : i32 to vector<4x256xi32>
    %50 = arith.addi %3, %49 : vector<4x256xi32>
    %c16_i32_29 = arith.constant 16 : i32
    %51 = vector.broadcast %c16_i32_29 : i32 to vector<4x256xi32>
    %52 = arith.cmpi slt, %50, %51 : vector<4x256xi32>
    %53 = arith.andi %48, %52 : vector<4x256xi1>
    %c0_30 = arith.constant 0 : index
    %c1 = arith.constant 1 : index
    %54 = vector.load %arg9[%c0_30, %c1] : memref<4x290xf32, #tpu.memory_space<vmem>>, vector<4x256xf32>
    %cst_31 = arith.constant 0.000000e+00 : f32
    %55 = vector.broadcast %cst_31 : f32 to vector<4x256xf32>
    %56 = arith.select %53, %54, %55 : vector<4x256xi1>, vector<4x256xf32>
    %57 = arith.truncf %56 : vector<4x256xf32> to vector<4x256xbf16>
    %c1_32 = arith.constant 1 : index
    %c0_33 = arith.constant 0 : index
    %c0_34 = arith.constant 0 : index
    %58 = vector.load %arg4[%c1_32, %c0_33, %c0_34] : memref<9x4x4xbf16, #tpu.memory_space<vmem>>, vector<1x4x4xbf16>
    %59 = vector.shape_cast %58 : vector<1x4x4xbf16> to vector<4x4xbf16>
    %cst_35 = arith.constant dense<0.000000e+00> : vector<4x256xf32>
    %60 = tpu.matmul %59, %57, %cst_35 {dimension_numbers = #tpu.dot_dimension_numbers<[1], [0], [0], [1], [0, 0, 1, 1], [], []>} : vector<4x4xbf16>, vector<4x256xbf16>, vector<4x256xf32> -> vector<4x256xf32>
    %61 = arith.addf %34, %60 : vector<4x256xf32>
    %c-1_i32_36 = arith.constant -1 : i32
    %62 = vector.broadcast %c-1_i32_36 : i32 to vector<4x256xi32>
    %63 = arith.addi %2, %62 : vector<4x256xi32>
    %c0_i32_37 = arith.constant 0 : i32
    %64 = vector.broadcast %c0_i32_37 : i32 to vector<4x256xi32>
    %65 = arith.cmpi sge, %63, %64 : vector<4x256xi32>
    %c-1_i32_38 = arith.constant -1 : i32
    %66 = vector.broadcast %c-1_i32_38 : i32 to vector<4x256xi32>
    %67 = arith.addi %2, %66 : vector<4x256xi32>
    %c16_i32_39 = arith.constant 16 : i32
    %68 = vector.broadcast %c16_i32_39 : i32 to vector<4x256xi32>
    %69 = arith.cmpi slt, %67, %68 : vector<4x256xi32>
    %70 = arith.andi %65, %69 : vector<4x256xi1>
    %c1_i32 = arith.constant 1 : i32
    %71 = vector.broadcast %c1_i32 : i32 to vector<4x256xi32>
    %72 = arith.addi %3, %71 : vector<4x256xi32>
    %c0_i32_40 = arith.constant 0 : i32
    %73 = vector.broadcast %c0_i32_40 : i32 to vector<4x256xi32>
    %74 = arith.cmpi sge, %72, %73 : vector<4x256xi32>
    %75 = arith.andi %70, %74 : vector<4x256xi1>
    %c1_i32_41 = arith.constant 1 : i32
    %76 = vector.broadcast %c1_i32_41 : i32 to vector<4x256xi32>
    %77 = arith.addi %3, %76 : vector<4x256xi32>
    %c16_i32_42 = arith.constant 16 : i32
    %78 = vector.broadcast %c16_i32_42 : i32 to vector<4x256xi32>
    %79 = arith.cmpi slt, %77, %78 : vector<4x256xi32>
    %80 = arith.andi %75, %79 : vector<4x256xi1>
    %c0_43 = arith.constant 0 : index
    %c2 = arith.constant 2 : index
    %81 = vector.load %arg9[%c0_43, %c2] : memref<4x290xf32, #tpu.memory_space<vmem>>, vector<4x256xf32>
    %cst_44 = arith.constant 0.000000e+00 : f32
    %82 = vector.broadcast %cst_44 : f32 to vector<4x256xf32>
    %83 = arith.select %80, %81, %82 : vector<4x256xi1>, vector<4x256xf32>
    %84 = arith.truncf %83 : vector<4x256xf32> to vector<4x256xbf16>
    %c2_45 = arith.constant 2 : index
    %c0_46 = arith.constant 0 : index
    %c0_47 = arith.constant 0 : index
    %85 = vector.load %arg4[%c2_45, %c0_46, %c0_47] : memref<9x4x4xbf16, #tpu.memory_space<vmem>>, vector<1x4x4xbf16>
    %86 = vector.shape_cast %85 : vector<1x4x4xbf16> to vector<4x4xbf16>
    %cst_48 = arith.constant dense<0.000000e+00> : vector<4x256xf32>
    %87 = tpu.matmul %86, %84, %cst_48 {dimension_numbers = #tpu.dot_dimension_numbers<[1], [0], [0], [1], [0, 0, 1, 1], [], []>} : vector<4x4xbf16>, vector<4x256xbf16>, vector<4x256xf32> -> vector<4x256xf32>
    %88 = arith.addf %61, %87 : vector<4x256xf32>
    %c0_i32_49 = arith.constant 0 : i32
    %89 = vector.broadcast %c0_i32_49 : i32 to vector<4x256xi32>
    %90 = arith.addi %2, %89 : vector<4x256xi32>
    %c0_i32_50 = arith.constant 0 : i32
    %91 = vector.broadcast %c0_i32_50 : i32 to vector<4x256xi32>
    %92 = arith.cmpi sge, %90, %91 : vector<4x256xi32>
    %c0_i32_51 = arith.constant 0 : i32
    %93 = vector.broadcast %c0_i32_51 : i32 to vector<4x256xi32>
    %94 = arith.addi %2, %93 : vector<4x256xi32>
    %c16_i32_52 = arith.constant 16 : i32
    %95 = vector.broadcast %c16_i32_52 : i32 to vector<4x256xi32>
    %96 = arith.cmpi slt, %94, %95 : vector<4x256xi32>
    %97 = arith.andi %92, %96 : vector<4x256xi1>
    %c-1_i32_53 = arith.constant -1 : i32
    %98 = vector.broadcast %c-1_i32_53 : i32 to vector<4x256xi32>
    %99 = arith.addi %3, %98 : vector<4x256xi32>
    %c0_i32_54 = arith.constant 0 : i32
    %100 = vector.broadcast %c0_i32_54 : i32 to vector<4x256xi32>
    %101 = arith.cmpi sge, %99, %100 : vector<4x256xi32>
    %102 = arith.andi %97, %101 : vector<4x256xi1>
    %c-1_i32_55 = arith.constant -1 : i32
    %103 = vector.broadcast %c-1_i32_55 : i32 to vector<4x256xi32>
    %104 = arith.addi %3, %103 : vector<4x256xi32>
    %c16_i32_56 = arith.constant 16 : i32
    %105 = vector.broadcast %c16_i32_56 : i32 to vector<4x256xi32>
    %106 = arith.cmpi slt, %104, %105 : vector<4x256xi32>
    %107 = arith.andi %102, %106 : vector<4x256xi1>
    %c0_57 = arith.constant 0 : index
    %c16 = arith.constant 16 : index
    %108 = vector.load %arg9[%c0_57, %c16] : memref<4x290xf32, #tpu.memory_space<vmem>>, vector<4x256xf32>
    %cst_58 = arith.constant 0.000000e+00 : f32
    %109 = vector.broadcast %cst_58 : f32 to vector<4x256xf32>
    %110 = arith.select %107, %108, %109 : vector<4x256xi1>, vector<4x256xf32>
    %111 = arith.truncf %110 : vector<4x256xf32> to vector<4x256xbf16>
    %c3 = arith.constant 3 : index
    %c0_59 = arith.constant 0 : index
    %c0_60 = arith.constant 0 : index
    %112 = vector.load %arg4[%c3, %c0_59, %c0_60] : memref<9x4x4xbf16, #tpu.memory_space<vmem>>, vector<1x4x4xbf16>
    %113 = vector.shape_cast %112 : vector<1x4x4xbf16> to vector<4x4xbf16>
    %cst_61 = arith.constant dense<0.000000e+00> : vector<4x256xf32>
    %114 = tpu.matmul %113, %111, %cst_61 {dimension_numbers = #tpu.dot_dimension_numbers<[1], [0], [0], [1], [0, 0, 1, 1], [], []>} : vector<4x4xbf16>, vector<4x256xbf16>, vector<4x256xf32> -> vector<4x256xf32>
    %115 = arith.addf %88, %114 : vector<4x256xf32>
    %c0_i32_62 = arith.constant 0 : i32
    %116 = vector.broadcast %c0_i32_62 : i32 to vector<4x256xi32>
    %117 = arith.addi %2, %116 : vector<4x256xi32>
    %c0_i32_63 = arith.constant 0 : i32
    %118 = vector.broadcast %c0_i32_63 : i32 to vector<4x256xi32>
    %119 = arith.cmpi sge, %117, %118 : vector<4x256xi32>
    %c0_i32_64 = arith.constant 0 : i32
    %120 = vector.broadcast %c0_i32_64 : i32 to vector<4x256xi32>
    %121 = arith.addi %2, %120 : vector<4x256xi32>
    %c16_i32_65 = arith.constant 16 : i32
    %122 = vector.broadcast %c16_i32_65 : i32 to vector<4x256xi32>
    %123 = arith.cmpi slt, %121, %122 : vector<4x256xi32>
    %124 = arith.andi %119, %123 : vector<4x256xi1>
    %c0_i32_66 = arith.constant 0 : i32
    %125 = vector.broadcast %c0_i32_66 : i32 to vector<4x256xi32>
    %126 = arith.addi %3, %125 : vector<4x256xi32>
    %c0_i32_67 = arith.constant 0 : i32
    %127 = vector.broadcast %c0_i32_67 : i32 to vector<4x256xi32>
    %128 = arith.cmpi sge, %126, %127 : vector<4x256xi32>
    %129 = arith.andi %124, %128 : vector<4x256xi1>
    %c0_i32_68 = arith.constant 0 : i32
    %130 = vector.broadcast %c0_i32_68 : i32 to vector<4x256xi32>
    %131 = arith.addi %3, %130 : vector<4x256xi32>
    %c16_i32_69 = arith.constant 16 : i32
    %132 = vector.broadcast %c16_i32_69 : i32 to vector<4x256xi32>
    %133 = arith.cmpi slt, %131, %132 : vector<4x256xi32>
    %134 = arith.andi %129, %133 : vector<4x256xi1>
    %c0_70 = arith.constant 0 : index
    %c17_71 = arith.constant 17 : index
    %135 = vector.load %arg9[%c0_70, %c17_71] : memref<4x290xf32, #tpu.memory_space<vmem>>, vector<4x256xf32>
    %cst_72 = arith.constant 0.000000e+00 : f32
    %136 = vector.broadcast %cst_72 : f32 to vector<4x256xf32>
    %137 = arith.select %134, %135, %136 : vector<4x256xi1>, vector<4x256xf32>
    %138 = arith.truncf %137 : vector<4x256xf32> to vector<4x256xbf16>
    %c4 = arith.constant 4 : index
    %c0_73 = arith.constant 0 : index
    %c0_74 = arith.constant 0 : index
    %139 = vector.load %arg4[%c4, %c0_73, %c0_74] : memref<9x4x4xbf16, #tpu.memory_space<vmem>>, vector<1x4x4xbf16>
    %140 = vector.shape_cast %139 : vector<1x4x4xbf16> to vector<4x4xbf16>
    %cst_75 = arith.constant dense<0.000000e+00> : vector<4x256xf32>
    %141 = tpu.matmul %140, %138, %cst_75 {dimension_numbers = #tpu.dot_dimension_numbers<[1], [0], [0], [1], [0, 0, 1, 1], [], []>} : vector<4x4xbf16>, vector<4x256xbf16>, vector<4x256xf32> -> vector<4x256xf32>
    %142 = arith.addf %115, %141 : vector<4x256xf32>
    %c0_i32_76 = arith.constant 0 : i32
    %143 = vector.broadcast %c0_i32_76 : i32 to vector<4x256xi32>
    %144 = arith.addi %2, %143 : vector<4x256xi32>
    %c0_i32_77 = arith.constant 0 : i32
    %145 = vector.broadcast %c0_i32_77 : i32 to vector<4x256xi32>
    %146 = arith.cmpi sge, %144, %145 : vector<4x256xi32>
    %c0_i32_78 = arith.constant 0 : i32
    %147 = vector.broadcast %c0_i32_78 : i32 to vector<4x256xi32>
    %148 = arith.addi %2, %147 : vector<4x256xi32>
    %c16_i32_79 = arith.constant 16 : i32
    %149 = vector.broadcast %c16_i32_79 : i32 to vector<4x256xi32>
    %150 = arith.cmpi slt, %148, %149 : vector<4x256xi32>
    %151 = arith.andi %146, %150 : vector<4x256xi1>
    %c1_i32_80 = arith.constant 1 : i32
    %152 = vector.broadcast %c1_i32_80 : i32 to vector<4x256xi32>
    %153 = arith.addi %3, %152 : vector<4x256xi32>
    %c0_i32_81 = arith.constant 0 : i32
    %154 = vector.broadcast %c0_i32_81 : i32 to vector<4x256xi32>
    %155 = arith.cmpi sge, %153, %154 : vector<4x256xi32>
    %156 = arith.andi %151, %155 : vector<4x256xi1>
    %c1_i32_82 = arith.constant 1 : i32
    %157 = vector.broadcast %c1_i32_82 : i32 to vector<4x256xi32>
    %158 = arith.addi %3, %157 : vector<4x256xi32>
    %c16_i32_83 = arith.constant 16 : i32
    %159 = vector.broadcast %c16_i32_83 : i32 to vector<4x256xi32>
    %160 = arith.cmpi slt, %158, %159 : vector<4x256xi32>
    %161 = arith.andi %156, %160 : vector<4x256xi1>
    %c0_84 = arith.constant 0 : index
    %c18 = arith.constant 18 : index
    %162 = vector.load %arg9[%c0_84, %c18] : memref<4x290xf32, #tpu.memory_space<vmem>>, vector<4x256xf32>
    %cst_85 = arith.constant 0.000000e+00 : f32
    %163 = vector.broadcast %cst_85 : f32 to vector<4x256xf32>
    %164 = arith.select %161, %162, %163 : vector<4x256xi1>, vector<4x256xf32>
    %165 = arith.truncf %164 : vector<4x256xf32> to vector<4x256xbf16>
    %c5 = arith.constant 5 : index
    %c0_86 = arith.constant 0 : index
    %c0_87 = arith.constant 0 : index
    %166 = vector.load %arg4[%c5, %c0_86, %c0_87] : memref<9x4x4xbf16, #tpu.memory_space<vmem>>, vector<1x4x4xbf16>
    %167 = vector.shape_cast %166 : vector<1x4x4xbf16> to vector<4x4xbf16>
    %cst_88 = arith.constant dense<0.000000e+00> : vector<4x256xf32>
    %168 = tpu.matmul %167, %165, %cst_88 {dimension_numbers = #tpu.dot_dimension_numbers<[1], [0], [0], [1], [0, 0, 1, 1], [], []>} : vector<4x4xbf16>, vector<4x256xbf16>, vector<4x256xf32> -> vector<4x256xf32>
    %169 = arith.addf %142, %168 : vector<4x256xf32>
    %c1_i32_89 = arith.constant 1 : i32
    %170 = vector.broadcast %c1_i32_89 : i32 to vector<4x256xi32>
    %171 = arith.addi %2, %170 : vector<4x256xi32>
    %c0_i32_90 = arith.constant 0 : i32
    %172 = vector.broadcast %c0_i32_90 : i32 to vector<4x256xi32>
    %173 = arith.cmpi sge, %171, %172 : vector<4x256xi32>
    %c1_i32_91 = arith.constant 1 : i32
    %174 = vector.broadcast %c1_i32_91 : i32 to vector<4x256xi32>
    %175 = arith.addi %2, %174 : vector<4x256xi32>
    %c16_i32_92 = arith.constant 16 : i32
    %176 = vector.broadcast %c16_i32_92 : i32 to vector<4x256xi32>
    %177 = arith.cmpi slt, %175, %176 : vector<4x256xi32>
    %178 = arith.andi %173, %177 : vector<4x256xi1>
    %c-1_i32_93 = arith.constant -1 : i32
    %179 = vector.broadcast %c-1_i32_93 : i32 to vector<4x256xi32>
    %180 = arith.addi %3, %179 : vector<4x256xi32>
    %c0_i32_94 = arith.constant 0 : i32
    %181 = vector.broadcast %c0_i32_94 : i32 to vector<4x256xi32>
    %182 = arith.cmpi sge, %180, %181 : vector<4x256xi32>
    %183 = arith.andi %178, %182 : vector<4x256xi1>
    %c-1_i32_95 = arith.constant -1 : i32
    %184 = vector.broadcast %c-1_i32_95 : i32 to vector<4x256xi32>
    %185 = arith.addi %3, %184 : vector<4x256xi32>
    %c16_i32_96 = arith.constant 16 : i32
    %186 = vector.broadcast %c16_i32_96 : i32 to vector<4x256xi32>
    %187 = arith.cmpi slt, %185, %186 : vector<4x256xi32>
    %188 = arith.andi %183, %187 : vector<4x256xi1>
    %c0_97 = arith.constant 0 : index
    %c32 = arith.constant 32 : index
    %189 = vector.load %arg9[%c0_97, %c32] : memref<4x290xf32, #tpu.memory_space<vmem>>, vector<4x256xf32>
    %cst_98 = arith.constant 0.000000e+00 : f32
    %190 = vector.broadcast %cst_98 : f32 to vector<4x256xf32>
    %191 = arith.select %188, %189, %190 : vector<4x256xi1>, vector<4x256xf32>
    %192 = arith.truncf %191 : vector<4x256xf32> to vector<4x256xbf16>
    %c6 = arith.constant 6 : index
    %c0_99 = arith.constant 0 : index
    %c0_100 = arith.constant 0 : index
    %193 = vector.load %arg4[%c6, %c0_99, %c0_100] : memref<9x4x4xbf16, #tpu.memory_space<vmem>>, vector<1x4x4xbf16>
    %194 = vector.shape_cast %193 : vector<1x4x4xbf16> to vector<4x4xbf16>
    %cst_101 = arith.constant dense<0.000000e+00> : vector<4x256xf32>
    %195 = tpu.matmul %194, %192, %cst_101 {dimension_numbers = #tpu.dot_dimension_numbers<[1], [0], [0], [1], [0, 0, 1, 1], [], []>} : vector<4x4xbf16>, vector<4x256xbf16>, vector<4x256xf32> -> vector<4x256xf32>
    %196 = arith.addf %169, %195 : vector<4x256xf32>
    %c1_i32_102 = arith.constant 1 : i32
    %197 = vector.broadcast %c1_i32_102 : i32 to vector<4x256xi32>
    %198 = arith.addi %2, %197 : vector<4x256xi32>
    %c0_i32_103 = arith.constant 0 : i32
    %199 = vector.broadcast %c0_i32_103 : i32 to vector<4x256xi32>
    %200 = arith.cmpi sge, %198, %199 : vector<4x256xi32>
    %c1_i32_104 = arith.constant 1 : i32
    %201 = vector.broadcast %c1_i32_104 : i32 to vector<4x256xi32>
    %202 = arith.addi %2, %201 : vector<4x256xi32>
    %c16_i32_105 = arith.constant 16 : i32
    %203 = vector.broadcast %c16_i32_105 : i32 to vector<4x256xi32>
    %204 = arith.cmpi slt, %202, %203 : vector<4x256xi32>
    %205 = arith.andi %200, %204 : vector<4x256xi1>
    %c0_i32_106 = arith.constant 0 : i32
    %206 = vector.broadcast %c0_i32_106 : i32 to vector<4x256xi32>
    %207 = arith.addi %3, %206 : vector<4x256xi32>
    %c0_i32_107 = arith.constant 0 : i32
    %208 = vector.broadcast %c0_i32_107 : i32 to vector<4x256xi32>
    %209 = arith.cmpi sge, %207, %208 : vector<4x256xi32>
    %210 = arith.andi %205, %209 : vector<4x256xi1>
    %c0_i32_108 = arith.constant 0 : i32
    %211 = vector.broadcast %c0_i32_108 : i32 to vector<4x256xi32>
    %212 = arith.addi %3, %211 : vector<4x256xi32>
    %c16_i32_109 = arith.constant 16 : i32
    %213 = vector.broadcast %c16_i32_109 : i32 to vector<4x256xi32>
    %214 = arith.cmpi slt, %212, %213 : vector<4x256xi32>
    %215 = arith.andi %210, %214 : vector<4x256xi1>
    %c0_110 = arith.constant 0 : index
    %c33 = arith.constant 33 : index
    %216 = vector.load %arg9[%c0_110, %c33] : memref<4x290xf32, #tpu.memory_space<vmem>>, vector<4x256xf32>
    %cst_111 = arith.constant 0.000000e+00 : f32
    %217 = vector.broadcast %cst_111 : f32 to vector<4x256xf32>
    %218 = arith.select %215, %216, %217 : vector<4x256xi1>, vector<4x256xf32>
    %219 = arith.truncf %218 : vector<4x256xf32> to vector<4x256xbf16>
    %c7 = arith.constant 7 : index
    %c0_112 = arith.constant 0 : index
    %c0_113 = arith.constant 0 : index
    %220 = vector.load %arg4[%c7, %c0_112, %c0_113] : memref<9x4x4xbf16, #tpu.memory_space<vmem>>, vector<1x4x4xbf16>
    %221 = vector.shape_cast %220 : vector<1x4x4xbf16> to vector<4x4xbf16>
    %cst_114 = arith.constant dense<0.000000e+00> : vector<4x256xf32>
    %222 = tpu.matmul %221, %219, %cst_114 {dimension_numbers = #tpu.dot_dimension_numbers<[1], [0], [0], [1], [0, 0, 1, 1], [], []>} : vector<4x4xbf16>, vector<4x256xbf16>, vector<4x256xf32> -> vector<4x256xf32>
    %223 = arith.addf %196, %222 : vector<4x256xf32>
    %c1_i32_115 = arith.constant 1 : i32
    %224 = vector.broadcast %c1_i32_115 : i32 to vector<4x256xi32>
    %225 = arith.addi %2, %224 : vector<4x256xi32>
    %c0_i32_116 = arith.constant 0 : i32
    %226 = vector.broadcast %c0_i32_116 : i32 to vector<4x256xi32>
    %227 = arith.cmpi sge, %225, %226 : vector<4x256xi32>
    %c1_i32_117 = arith.constant 1 : i32
    %228 = vector.broadcast %c1_i32_117 : i32 to vector<4x256xi32>
    %229 = arith.addi %2, %228 : vector<4x256xi32>
    %c16_i32_118 = arith.constant 16 : i32
    %230 = vector.broadcast %c16_i32_118 : i32 to vector<4x256xi32>
    %231 = arith.cmpi slt, %229, %230 : vector<4x256xi32>
    %232 = arith.andi %227, %231 : vector<4x256xi1>
    %c1_i32_119 = arith.constant 1 : i32
    %233 = vector.broadcast %c1_i32_119 : i32 to vector<4x256xi32>
    %234 = arith.addi %3, %233 : vector<4x256xi32>
    %c0_i32_120 = arith.constant 0 : i32
    %235 = vector.broadcast %c0_i32_120 : i32 to vector<4x256xi32>
    %236 = arith.cmpi sge, %234, %235 : vector<4x256xi32>
    %237 = arith.andi %232, %236 : vector<4x256xi1>
    %c1_i32_121 = arith.constant 1 : i32
    %238 = vector.broadcast %c1_i32_121 : i32 to vector<4x256xi32>
    %239 = arith.addi %3, %238 : vector<4x256xi32>
    %c16_i32_122 = arith.constant 16 : i32
    %240 = vector.broadcast %c16_i32_122 : i32 to vector<4x256xi32>
    %241 = arith.cmpi slt, %239, %240 : vector<4x256xi32>
    %242 = arith.andi %237, %241 : vector<4x256xi1>
    %c0_123 = arith.constant 0 : index
    %c34 = arith.constant 34 : index
    %243 = vector.load %arg9[%c0_123, %c34] : memref<4x290xf32, #tpu.memory_space<vmem>>, vector<4x256xf32>
    %cst_124 = arith.constant 0.000000e+00 : f32
    %244 = vector.broadcast %cst_124 : f32 to vector<4x256xf32>
    %245 = arith.select %242, %243, %244 : vector<4x256xi1>, vector<4x256xf32>
    %246 = arith.truncf %245 : vector<4x256xf32> to vector<4x256xbf16>
    %c8 = arith.constant 8 : index
    %c0_125 = arith.constant 0 : index
    %c0_126 = arith.constant 0 : index
    %247 = vector.load %arg4[%c8, %c0_125, %c0_126] : memref<9x4x4xbf16, #tpu.memory_space<vmem>>, vector<1x4x4xbf16>
    %248 = vector.shape_cast %247 : vector<1x4x4xbf16> to vector<4x4xbf16>
    %cst_127 = arith.constant dense<0.000000e+00> : vector<4x256xf32>
    %249 = tpu.matmul %248, %246, %cst_127 {dimension_numbers = #tpu.dot_dimension_numbers<[1], [0], [0], [1], [0, 0, 1, 1], [], []>} : vector<4x4xbf16>, vector<4x256xbf16>, vector<4x256xf32> -> vector<4x256xf32>
    %250 = arith.addf %223, %249 : vector<4x256xf32>
    %c0_128 = arith.constant 0 : index
    %c0_129 = arith.constant 0 : index
    %251 = vector.load %arg5[%c0_128, %c0_129] : memref<4x1xf32, #tpu.memory_space<vmem>>, vector<4x1xf32>
    %252 = vector.broadcast %251 : vector<4x1xf32> to vector<4x256xf32>
    %253 = arith.addf %250, %252 : vector<4x256xf32>
    %cst_130 = arith.constant 0.000000e+00 : f32
    %254 = vector.broadcast %cst_130 : f32 to vector<4x256xf32>
    %255 = arith.maximumf %253, %254 : vector<4x256xf32>
    %c0_131 = arith.constant 0 : index
    %c17_132 = arith.constant 17 : index
    %256 = vector.load %arg9[%c0_131, %c17_132] : memref<4x290xf32, #tpu.memory_space<vmem>>, vector<4x256xf32>
    tpu.vector_store %arg9[%c0_131, %c17_132], %255 {strides = array<i32>} : memref<4x290xf32, #tpu.memory_space<vmem>>, vector<4x256xf32>,
    %cst_133 = arith.constant 0.000000e+00 : f32
    %257 = vector.broadcast %cst_133 : f32 to vector<4x256xf32>
    %c-1_i32_134 = arith.constant -1 : i32
    %258 = vector.broadcast %c-1_i32_134 : i32 to vector<4x256xi32>
    %259 = arith.addi %2, %258 : vector<4x256xi32>
    %c0_i32_135 = arith.constant 0 : i32
    %260 = vector.broadcast %c0_i32_135 : i32 to vector<4x256xi32>
    %261 = arith.cmpi sge, %259, %260 : vector<4x256xi32>
    %c-1_i32_136 = arith.constant -1 : i32
    %262 = vector.broadcast %c-1_i32_136 : i32 to vector<4x256xi32>
    %263 = arith.addi %2, %262 : vector<4x256xi32>
    %c16_i32_137 = arith.constant 16 : i32
    %264 = vector.broadcast %c16_i32_137 : i32 to vector<4x256xi32>
    %265 = arith.cmpi slt, %263, %264 : vector<4x256xi32>
    %266 = arith.andi %261, %265 : vector<4x256xi1>
    %c-1_i32_138 = arith.constant -1 : i32
    %267 = vector.broadcast %c-1_i32_138 : i32 to vector<4x256xi32>
    %268 = arith.addi %3, %267 : vector<4x256xi32>
    %c0_i32_139 = arith.constant 0 : i32
    %269 = vector.broadcast %c0_i32_139 : i32 to vector<4x256xi32>
    %270 = arith.cmpi sge, %268, %269 : vector<4x256xi32>
    %271 = arith.andi %266, %270 : vector<4x256xi1>
    %c-1_i32_140 = arith.constant -1 : i32
    %272 = vector.broadcast %c-1_i32_140 : i32 to vector<4x256xi32>
    %273 = arith.addi %3, %272 : vector<4x256xi32>
    %c16_i32_141 = arith.constant 16 : i32
    %274 = vector.broadcast %c16_i32_141 : i32 to vector<4x256xi32>
    %275 = arith.cmpi slt, %273, %274 : vector<4x256xi32>
    %276 = arith.andi %271, %275 : vector<4x256xi1>
    %c0_142 = arith.constant 0 : index
    %c0_143 = arith.constant 0 : index
    %277 = vector.load %arg9[%c0_142, %c0_143] : memref<4x290xf32, #tpu.memory_space<vmem>>, vector<4x256xf32>
    %cst_144 = arith.constant 0.000000e+00 : f32
    %278 = vector.broadcast %cst_144 : f32 to vector<4x256xf32>
    %279 = arith.select %276, %277, %278 : vector<4x256xi1>, vector<4x256xf32>
    %280 = arith.truncf %279 : vector<4x256xf32> to vector<4x256xbf16>
    %c0_145 = arith.constant 0 : index
    %c0_146 = arith.constant 0 : index
    %c0_147 = arith.constant 0 : index
    %281 = vector.load %arg6[%c0_145, %c0_146, %c0_147] : memref<9x4x4xbf16, #tpu.memory_space<vmem>>, vector<1x4x4xbf16>
    %282 = vector.shape_cast %281 : vector<1x4x4xbf16> to vector<4x4xbf16>
    %cst_148 = arith.constant dense<0.000000e+00> : vector<4x256xf32>
    %283 = tpu.matmul %282, %280, %cst_148 {dimension_numbers = #tpu.dot_dimension_numbers<[1], [0], [0], [1], [0, 0, 1, 1], [], []>} : vector<4x4xbf16>, vector<4x256xbf16>, vector<4x256xf32> -> vector<4x256xf32>
    %284 = arith.addf %257, %283 : vector<4x256xf32>
    %c-1_i32_149 = arith.constant -1 : i32
    %285 = vector.broadcast %c-1_i32_149 : i32 to vector<4x256xi32>
    %286 = arith.addi %2, %285 : vector<4x256xi32>
    %c0_i32_150 = arith.constant 0 : i32
    %287 = vector.broadcast %c0_i32_150 : i32 to vector<4x256xi32>
    %288 = arith.cmpi sge, %286, %287 : vector<4x256xi32>
    %c-1_i32_151 = arith.constant -1 : i32
    %289 = vector.broadcast %c-1_i32_151 : i32 to vector<4x256xi32>
    %290 = arith.addi %2, %289 : vector<4x256xi32>
    %c16_i32_152 = arith.constant 16 : i32
    %291 = vector.broadcast %c16_i32_152 : i32 to vector<4x256xi32>
    %292 = arith.cmpi slt, %290, %291 : vector<4x256xi32>
    %293 = arith.andi %288, %292 : vector<4x256xi1>
    %c0_i32_153 = arith.constant 0 : i32
    %294 = vector.broadcast %c0_i32_153 : i32 to vector<4x256xi32>
    %295 = arith.addi %3, %294 : vector<4x256xi32>
    %c0_i32_154 = arith.constant 0 : i32
    %296 = vector.broadcast %c0_i32_154 : i32 to vector<4x256xi32>
    %297 = arith.cmpi sge, %295, %296 : vector<4x256xi32>
    %298 = arith.andi %293, %297 : vector<4x256xi1>
    %c0_i32_155 = arith.constant 0 : i32
    %299 = vector.broadcast %c0_i32_155 : i32 to vector<4x256xi32>
    %300 = arith.addi %3, %299 : vector<4x256xi32>
    %c16_i32_156 = arith.constant 16 : i32
    %301 = vector.broadcast %c16_i32_156 : i32 to vector<4x256xi32>
    %302 = arith.cmpi slt, %300, %301 : vector<4x256xi32>
    %303 = arith.andi %298, %302 : vector<4x256xi1>
    %c0_157 = arith.constant 0 : index
    %c1_158 = arith.constant 1 : index
    %304 = vector.load %arg9[%c0_157, %c1_158] : memref<4x290xf32, #tpu.memory_space<vmem>>, vector<4x256xf32>
    %cst_159 = arith.constant 0.000000e+00 : f32
    %305 = vector.broadcast %cst_159 : f32 to vector<4x256xf32>
    %306 = arith.select %303, %304, %305 : vector<4x256xi1>, vector<4x256xf32>
    %307 = arith.truncf %306 : vector<4x256xf32> to vector<4x256xbf16>
    %c1_160 = arith.constant 1 : index
    %c0_161 = arith.constant 0 : index
    %c0_162 = arith.constant 0 : index
    %308 = vector.load %arg6[%c1_160, %c0_161, %c0_162] : memref<9x4x4xbf16, #tpu.memory_space<vmem>>, vector<1x4x4xbf16>
    %309 = vector.shape_cast %308 : vector<1x4x4xbf16> to vector<4x4xbf16>
    %cst_163 = arith.constant dense<0.000000e+00> : vector<4x256xf32>
    %310 = tpu.matmul %309, %307, %cst_163 {dimension_numbers = #tpu.dot_dimension_numbers<[1], [0], [0], [1], [0, 0, 1, 1], [], []>} : vector<4x4xbf16>, vector<4x256xbf16>, vector<4x256xf32> -> vector<4x256xf32>
    %311 = arith.addf %284, %310 : vector<4x256xf32>
    %c-1_i32_164 = arith.constant -1 : i32
    %312 = vector.broadcast %c-1_i32_164 : i32 to vector<4x256xi32>
    %313 = arith.addi %2, %312 : vector<4x256xi32>
    %c0_i32_165 = arith.constant 0 : i32
    %314 = vector.broadcast %c0_i32_165 : i32 to vector<4x256xi32>
    %315 = arith.cmpi sge, %313, %314 : vector<4x256xi32>
    %c-1_i32_166 = arith.constant -1 : i32
    %316 = vector.broadcast %c-1_i32_166 : i32 to vector<4x256xi32>
    %317 = arith.addi %2, %316 : vector<4x256xi32>
    %c16_i32_167 = arith.constant 16 : i32
    %318 = vector.broadcast %c16_i32_167 : i32 to vector<4x256xi32>
    %319 = arith.cmpi slt, %317, %318 : vector<4x256xi32>
    %320 = arith.andi %315, %319 : vector<4x256xi1>
    %c1_i32_168 = arith.constant 1 : i32
    %321 = vector.broadcast %c1_i32_168 : i32 to vector<4x256xi32>
    %322 = arith.addi %3, %321 : vector<4x256xi32>
    %c0_i32_169 = arith.constant 0 : i32
    %323 = vector.broadcast %c0_i32_169 : i32 to vector<4x256xi32>
    %324 = arith.cmpi sge, %322, %323 : vector<4x256xi32>
    %325 = arith.andi %320, %324 : vector<4x256xi1>
    %c1_i32_170 = arith.constant 1 : i32
    %326 = vector.broadcast %c1_i32_170 : i32 to vector<4x256xi32>
    %327 = arith.addi %3, %326 : vector<4x256xi32>
    %c16_i32_171 = arith.constant 16 : i32
    %328 = vector.broadcast %c16_i32_171 : i32 to vector<4x256xi32>
    %329 = arith.cmpi slt, %327, %328 : vector<4x256xi32>
    %330 = arith.andi %325, %329 : vector<4x256xi1>
    %c0_172 = arith.constant 0 : index
    %c2_173 = arith.constant 2 : index
    %331 = vector.load %arg9[%c0_172, %c2_173] : memref<4x290xf32, #tpu.memory_space<vmem>>, vector<4x256xf32>
    %cst_174 = arith.constant 0.000000e+00 : f32
    %332 = vector.broadcast %cst_174 : f32 to vector<4x256xf32>
    %333 = arith.select %330, %331, %332 : vector<4x256xi1>, vector<4x256xf32>
    %334 = arith.truncf %333 : vector<4x256xf32> to vector<4x256xbf16>
    %c2_175 = arith.constant 2 : index
    %c0_176 = arith.constant 0 : index
    %c0_177 = arith.constant 0 : index
    %335 = vector.load %arg6[%c2_175, %c0_176, %c0_177] : memref<9x4x4xbf16, #tpu.memory_space<vmem>>, vector<1x4x4xbf16>
    %336 = vector.shape_cast %335 : vector<1x4x4xbf16> to vector<4x4xbf16>
    %cst_178 = arith.constant dense<0.000000e+00> : vector<4x256xf32>
    %337 = tpu.matmul %336, %334, %cst_178 {dimension_numbers = #tpu.dot_dimension_numbers<[1], [0], [0], [1], [0, 0, 1, 1], [], []>} : vector<4x4xbf16>, vector<4x256xbf16>, vector<4x256xf32> -> vector<4x256xf32>
    %338 = arith.addf %311, %337 : vector<4x256xf32>
    %c0_i32_179 = arith.constant 0 : i32
    %339 = vector.broadcast %c0_i32_179 : i32 to vector<4x256xi32>
    %340 = arith.addi %2, %339 : vector<4x256xi32>
    %c0_i32_180 = arith.constant 0 : i32
    %341 = vector.broadcast %c0_i32_180 : i32 to vector<4x256xi32>
    %342 = arith.cmpi sge, %340, %341 : vector<4x256xi32>
    %c0_i32_181 = arith.constant 0 : i32
    %343 = vector.broadcast %c0_i32_181 : i32 to vector<4x256xi32>
    %344 = arith.addi %2, %343 : vector<4x256xi32>
    %c16_i32_182 = arith.constant 16 : i32
    %345 = vector.broadcast %c16_i32_182 : i32 to vector<4x256xi32>
    %346 = arith.cmpi slt, %344, %345 : vector<4x256xi32>
    %347 = arith.andi %342, %346 : vector<4x256xi1>
    %c-1_i32_183 = arith.constant -1 : i32
    %348 = vector.broadcast %c-1_i32_183 : i32 to vector<4x256xi32>
    %349 = arith.addi %3, %348 : vector<4x256xi32>
    %c0_i32_184 = arith.constant 0 : i32
    %350 = vector.broadcast %c0_i32_184 : i32 to vector<4x256xi32>
    %351 = arith.cmpi sge, %349, %350 : vector<4x256xi32>
    %352 = arith.andi %347, %351 : vector<4x256xi1>
    %c-1_i32_185 = arith.constant -1 : i32
    %353 = vector.broadcast %c-1_i32_185 : i32 to vector<4x256xi32>
    %354 = arith.addi %3, %353 : vector<4x256xi32>
    %c16_i32_186 = arith.constant 16 : i32
    %355 = vector.broadcast %c16_i32_186 : i32 to vector<4x256xi32>
    %356 = arith.cmpi slt, %354, %355 : vector<4x256xi32>
    %357 = arith.andi %352, %356 : vector<4x256xi1>
    %c0_187 = arith.constant 0 : index
    %c16_188 = arith.constant 16 : index
    %358 = vector.load %arg9[%c0_187, %c16_188] : memref<4x290xf32, #tpu.memory_space<vmem>>, vector<4x256xf32>
    %cst_189 = arith.constant 0.000000e+00 : f32
    %359 = vector.broadcast %cst_189 : f32 to vector<4x256xf32>
    %360 = arith.select %357, %358, %359 : vector<4x256xi1>, vector<4x256xf32>
    %361 = arith.truncf %360 : vector<4x256xf32> to vector<4x256xbf16>
    %c3_190 = arith.constant 3 : index
    %c0_191 = arith.constant 0 : index
    %c0_192 = arith.constant 0 : index
    %362 = vector.load %arg6[%c3_190, %c0_191, %c0_192] : memref<9x4x4xbf16, #tpu.memory_space<vmem>>, vector<1x4x4xbf16>
    %363 = vector.shape_cast %362 : vector<1x4x4xbf16> to vector<4x4xbf16>
    %cst_193 = arith.constant dense<0.000000e+00> : vector<4x256xf32>
    %364 = tpu.matmul %363, %361, %cst_193 {dimension_numbers = #tpu.dot_dimension_numbers<[1], [0], [0], [1], [0, 0, 1, 1], [], []>} : vector<4x4xbf16>, vector<4x256xbf16>, vector<4x256xf32> -> vector<4x256xf32>
    %365 = arith.addf %338, %364 : vector<4x256xf32>
    %c0_i32_194 = arith.constant 0 : i32
    %366 = vector.broadcast %c0_i32_194 : i32 to vector<4x256xi32>
    %367 = arith.addi %2, %366 : vector<4x256xi32>
    %c0_i32_195 = arith.constant 0 : i32
    %368 = vector.broadcast %c0_i32_195 : i32 to vector<4x256xi32>
    %369 = arith.cmpi sge, %367, %368 : vector<4x256xi32>
    %c0_i32_196 = arith.constant 0 : i32
    %370 = vector.broadcast %c0_i32_196 : i32 to vector<4x256xi32>
    %371 = arith.addi %2, %370 : vector<4x256xi32>
    %c16_i32_197 = arith.constant 16 : i32
    %372 = vector.broadcast %c16_i32_197 : i32 to vector<4x256xi32>
    %373 = arith.cmpi slt, %371, %372 : vector<4x256xi32>
    %374 = arith.andi %369, %373 : vector<4x256xi1>
    %c0_i32_198 = arith.constant 0 : i32
    %375 = vector.broadcast %c0_i32_198 : i32 to vector<4x256xi32>
    %376 = arith.addi %3, %375 : vector<4x256xi32>
    %c0_i32_199 = arith.constant 0 : i32
    %377 = vector.broadcast %c0_i32_199 : i32 to vector<4x256xi32>
    %378 = arith.cmpi sge, %376, %377 : vector<4x256xi32>
    %379 = arith.andi %374, %378 : vector<4x256xi1>
    %c0_i32_200 = arith.constant 0 : i32
    %380 = vector.broadcast %c0_i32_200 : i32 to vector<4x256xi32>
    %381 = arith.addi %3, %380 : vector<4x256xi32>
    %c16_i32_201 = arith.constant 16 : i32
    %382 = vector.broadcast %c16_i32_201 : i32 to vector<4x256xi32>
    %383 = arith.cmpi slt, %381, %382 : vector<4x256xi32>
    %384 = arith.andi %379, %383 : vector<4x256xi1>
    %c0_202 = arith.constant 0 : index
    %c17_203 = arith.constant 17 : index
    %385 = vector.load %arg9[%c0_202, %c17_203] : memref<4x290xf32, #tpu.memory_space<vmem>>, vector<4x256xf32>
    %cst_204 = arith.constant 0.000000e+00 : f32
    %386 = vector.broadcast %cst_204 : f32 to vector<4x256xf32>
    %387 = arith.select %384, %385, %386 : vector<4x256xi1>, vector<4x256xf32>
    %388 = arith.truncf %387 : vector<4x256xf32> to vector<4x256xbf16>
    %c4_205 = arith.constant 4 : index
    %c0_206 = arith.constant 0 : index
    %c0_207 = arith.constant 0 : index
    %389 = vector.load %arg6[%c4_205, %c0_206, %c0_207] : memref<9x4x4xbf16, #tpu.memory_space<vmem>>, vector<1x4x4xbf16>
    %390 = vector.shape_cast %389 : vector<1x4x4xbf16> to vector<4x4xbf16>
    %cst_208 = arith.constant dense<0.000000e+00> : vector<4x256xf32>
    %391 = tpu.matmul %390, %388, %cst_208 {dimension_numbers = #tpu.dot_dimension_numbers<[1], [0], [0], [1], [0, 0, 1, 1], [], []>} : vector<4x4xbf16>, vector<4x256xbf16>, vector<4x256xf32> -> vector<4x256xf32>
    %392 = arith.addf %365, %391 : vector<4x256xf32>
    %c0_i32_209 = arith.constant 0 : i32
    %393 = vector.broadcast %c0_i32_209 : i32 to vector<4x256xi32>
    %394 = arith.addi %2, %393 : vector<4x256xi32>
    %c0_i32_210 = arith.constant 0 : i32
    %395 = vector.broadcast %c0_i32_210 : i32 to vector<4x256xi32>
    %396 = arith.cmpi sge, %394, %395 : vector<4x256xi32>
    %c0_i32_211 = arith.constant 0 : i32
    %397 = vector.broadcast %c0_i32_211 : i32 to vector<4x256xi32>
    %398 = arith.addi %2, %397 : vector<4x256xi32>
    %c16_i32_212 = arith.constant 16 : i32
    %399 = vector.broadcast %c16_i32_212 : i32 to vector<4x256xi32>
    %400 = arith.cmpi slt, %398, %399 : vector<4x256xi32>
    %401 = arith.andi %396, %400 : vector<4x256xi1>
    %c1_i32_213 = arith.constant 1 : i32
    %402 = vector.broadcast %c1_i32_213 : i32 to vector<4x256xi32>
    %403 = arith.addi %3, %402 : vector<4x256xi32>
    %c0_i32_214 = arith.constant 0 : i32
    %404 = vector.broadcast %c0_i32_214 : i32 to vector<4x256xi32>
    %405 = arith.cmpi sge, %403, %404 : vector<4x256xi32>
    %406 = arith.andi %401, %405 : vector<4x256xi1>
    %c1_i32_215 = arith.constant 1 : i32
    %407 = vector.broadcast %c1_i32_215 : i32 to vector<4x256xi32>
    %408 = arith.addi %3, %407 : vector<4x256xi32>
    %c16_i32_216 = arith.constant 16 : i32
    %409 = vector.broadcast %c16_i32_216 : i32 to vector<4x256xi32>
    %410 = arith.cmpi slt, %408, %409 : vector<4x256xi32>
    %411 = arith.andi %406, %410 : vector<4x256xi1>
    %c0_217 = arith.constant 0 : index
    %c18_218 = arith.constant 18 : index
    %412 = vector.load %arg9[%c0_217, %c18_218] : memref<4x290xf32, #tpu.memory_space<vmem>>, vector<4x256xf32>
    %cst_219 = arith.constant 0.000000e+00 : f32
    %413 = vector.broadcast %cst_219 : f32 to vector<4x256xf32>
    %414 = arith.select %411, %412, %413 : vector<4x256xi1>, vector<4x256xf32>
    %415 = arith.truncf %414 : vector<4x256xf32> to vector<4x256xbf16>
    %c5_220 = arith.constant 5 : index
    %c0_221 = arith.constant 0 : index
    %c0_222 = arith.constant 0 : index
    %416 = vector.load %arg6[%c5_220, %c0_221, %c0_222] : memref<9x4x4xbf16, #tpu.memory_space<vmem>>, vector<1x4x4xbf16>
    %417 = vector.shape_cast %416 : vector<1x4x4xbf16> to vector<4x4xbf16>
    %cst_223 = arith.constant dense<0.000000e+00> : vector<4x256xf32>
    %418 = tpu.matmul %417, %415, %cst_223 {dimension_numbers = #tpu.dot_dimension_numbers<[1], [0], [0], [1], [0, 0, 1, 1], [], []>} : vector<4x4xbf16>, vector<4x256xbf16>, vector<4x256xf32> -> vector<4x256xf32>
    %419 = arith.addf %392, %418 : vector<4x256xf32>
    %c1_i32_224 = arith.constant 1 : i32
    %420 = vector.broadcast %c1_i32_224 : i32 to vector<4x256xi32>
    %421 = arith.addi %2, %420 : vector<4x256xi32>
    %c0_i32_225 = arith.constant 0 : i32
    %422 = vector.broadcast %c0_i32_225 : i32 to vector<4x256xi32>
    %423 = arith.cmpi sge, %421, %422 : vector<4x256xi32>
    %c1_i32_226 = arith.constant 1 : i32
    %424 = vector.broadcast %c1_i32_226 : i32 to vector<4x256xi32>
    %425 = arith.addi %2, %424 : vector<4x256xi32>
    %c16_i32_227 = arith.constant 16 : i32
    %426 = vector.broadcast %c16_i32_227 : i32 to vector<4x256xi32>
    %427 = arith.cmpi slt, %425, %426 : vector<4x256xi32>
    %428 = arith.andi %423, %427 : vector<4x256xi1>
    %c-1_i32_228 = arith.constant -1 : i32
    %429 = vector.broadcast %c-1_i32_228 : i32 to vector<4x256xi32>
    %430 = arith.addi %3, %429 : vector<4x256xi32>
    %c0_i32_229 = arith.constant 0 : i32
    %431 = vector.broadcast %c0_i32_229 : i32 to vector<4x256xi32>
    %432 = arith.cmpi sge, %430, %431 : vector<4x256xi32>
    %433 = arith.andi %428, %432 : vector<4x256xi1>
    %c-1_i32_230 = arith.constant -1 : i32
    %434 = vector.broadcast %c-1_i32_230 : i32 to vector<4x256xi32>
    %435 = arith.addi %3, %434 : vector<4x256xi32>
    %c16_i32_231 = arith.constant 16 : i32
    %436 = vector.broadcast %c16_i32_231 : i32 to vector<4x256xi32>
    %437 = arith.cmpi slt, %435, %436 : vector<4x256xi32>
    %438 = arith.andi %433, %437 : vector<4x256xi1>
    %c0_232 = arith.constant 0 : index
    %c32_233 = arith.constant 32 : index
    %439 = vector.load %arg9[%c0_232, %c32_233] : memref<4x290xf32, #tpu.memory_space<vmem>>, vector<4x256xf32>
    %cst_234 = arith.constant 0.000000e+00 : f32
    %440 = vector.broadcast %cst_234 : f32 to vector<4x256xf32>
    %441 = arith.select %438, %439, %440 : vector<4x256xi1>, vector<4x256xf32>
    %442 = arith.truncf %441 : vector<4x256xf32> to vector<4x256xbf16>
    %c6_235 = arith.constant 6 : index
    %c0_236 = arith.constant 0 : index
    %c0_237 = arith.constant 0 : index
    %443 = vector.load %arg6[%c6_235, %c0_236, %c0_237] : memref<9x4x4xbf16, #tpu.memory_space<vmem>>, vector<1x4x4xbf16>
    %444 = vector.shape_cast %443 : vector<1x4x4xbf16> to vector<4x4xbf16>
    %cst_238 = arith.constant dense<0.000000e+00> : vector<4x256xf32>
    %445 = tpu.matmul %444, %442, %cst_238 {dimension_numbers = #tpu.dot_dimension_numbers<[1], [0], [0], [1], [0, 0, 1, 1], [], []>} : vector<4x4xbf16>, vector<4x256xbf16>, vector<4x256xf32> -> vector<4x256xf32>
    %446 = arith.addf %419, %445 : vector<4x256xf32>
    %c1_i32_239 = arith.constant 1 : i32
    %447 = vector.broadcast %c1_i32_239 : i32 to vector<4x256xi32>
    %448 = arith.addi %2, %447 : vector<4x256xi32>
    %c0_i32_240 = arith.constant 0 : i32
    %449 = vector.broadcast %c0_i32_240 : i32 to vector<4x256xi32>
    %450 = arith.cmpi sge, %448, %449 : vector<4x256xi32>
    %c1_i32_241 = arith.constant 1 : i32
    %451 = vector.broadcast %c1_i32_241 : i32 to vector<4x256xi32>
    %452 = arith.addi %2, %451 : vector<4x256xi32>
    %c16_i32_242 = arith.constant 16 : i32
    %453 = vector.broadcast %c16_i32_242 : i32 to vector<4x256xi32>
    %454 = arith.cmpi slt, %452, %453 : vector<4x256xi32>
    %455 = arith.andi %450, %454 : vector<4x256xi1>
    %c0_i32_243 = arith.constant 0 : i32
    %456 = vector.broadcast %c0_i32_243 : i32 to vector<4x256xi32>
    %457 = arith.addi %3, %456 : vector<4x256xi32>
    %c0_i32_244 = arith.constant 0 : i32
    %458 = vector.broadcast %c0_i32_244 : i32 to vector<4x256xi32>
    %459 = arith.cmpi sge, %457, %458 : vector<4x256xi32>
    %460 = arith.andi %455, %459 : vector<4x256xi1>
    %c0_i32_245 = arith.constant 0 : i32
    %461 = vector.broadcast %c0_i32_245 : i32 to vector<4x256xi32>
    %462 = arith.addi %3, %461 : vector<4x256xi32>
    %c16_i32_246 = arith.constant 16 : i32
    %463 = vector.broadcast %c16_i32_246 : i32 to vector<4x256xi32>
    %464 = arith.cmpi slt, %462, %463 : vector<4x256xi32>
    %465 = arith.andi %460, %464 : vector<4x256xi1>
    %c0_247 = arith.constant 0 : index
    %c33_248 = arith.constant 33 : index
    %466 = vector.load %arg9[%c0_247, %c33_248] : memref<4x290xf32, #tpu.memory_space<vmem>>, vector<4x256xf32>
    %cst_249 = arith.constant 0.000000e+00 : f32
    %467 = vector.broadcast %cst_249 : f32 to vector<4x256xf32>
    %468 = arith.select %465, %466, %467 : vector<4x256xi1>, vector<4x256xf32>
    %469 = arith.truncf %468 : vector<4x256xf32> to vector<4x256xbf16>
    %c7_250 = arith.constant 7 : index
    %c0_251 = arith.constant 0 : index
    %c0_252 = arith.constant 0 : index
    %470 = vector.load %arg6[%c7_250, %c0_251, %c0_252] : memref<9x4x4xbf16, #tpu.memory_space<vmem>>, vector<1x4x4xbf16>
    %471 = vector.shape_cast %470 : vector<1x4x4xbf16> to vector<4x4xbf16>
    %cst_253 = arith.constant dense<0.000000e+00> : vector<4x256xf32>
    %472 = tpu.matmul %471, %469, %cst_253 {dimension_numbers = #tpu.dot_dimension_numbers<[1], [0], [0], [1], [0, 0, 1, 1], [], []>} : vector<4x4xbf16>, vector<4x256xbf16>, vector<4x256xf32> -> vector<4x256xf32>
    %473 = arith.addf %446, %472 : vector<4x256xf32>
    %c1_i32_254 = arith.constant 1 : i32
    %474 = vector.broadcast %c1_i32_254 : i32 to vector<4x256xi32>
    %475 = arith.addi %2, %474 : vector<4x256xi32>
    %c0_i32_255 = arith.constant 0 : i32
    %476 = vector.broadcast %c0_i32_255 : i32 to vector<4x256xi32>
    %477 = arith.cmpi sge, %475, %476 : vector<4x256xi32>
    %c1_i32_256 = arith.constant 1 : i32
    %478 = vector.broadcast %c1_i32_256 : i32 to vector<4x256xi32>
    %479 = arith.addi %2, %478 : vector<4x256xi32>
    %c16_i32_257 = arith.constant 16 : i32
    %480 = vector.broadcast %c16_i32_257 : i32 to vector<4x256xi32>
    %481 = arith.cmpi slt, %479, %480 : vector<4x256xi32>
    %482 = arith.andi %477, %481 : vector<4x256xi1>
    %c1_i32_258 = arith.constant 1 : i32
    %483 = vector.broadcast %c1_i32_258 : i32 to vector<4x256xi32>
    %484 = arith.addi %3, %483 : vector<4x256xi32>
    %c0_i32_259 = arith.constant 0 : i32
    %485 = vector.broadcast %c0_i32_259 : i32 to vector<4x256xi32>
    %486 = arith.cmpi sge, %484, %485 : vector<4x256xi32>
    %487 = arith.andi %482, %486 : vector<4x256xi1>
    %c1_i32_260 = arith.constant 1 : i32
    %488 = vector.broadcast %c1_i32_260 : i32 to vector<4x256xi32>
    %489 = arith.addi %3, %488 : vector<4x256xi32>
    %c16_i32_261 = arith.constant 16 : i32
    %490 = vector.broadcast %c16_i32_261 : i32 to vector<4x256xi32>
    %491 = arith.cmpi slt, %489, %490 : vector<4x256xi32>
    %492 = arith.andi %487, %491 : vector<4x256xi1>
    %c0_262 = arith.constant 0 : index
    %c34_263 = arith.constant 34 : index
    %493 = vector.load %arg9[%c0_262, %c34_263] : memref<4x290xf32, #tpu.memory_space<vmem>>, vector<4x256xf32>
    %cst_264 = arith.constant 0.000000e+00 : f32
    %494 = vector.broadcast %cst_264 : f32 to vector<4x256xf32>
    %495 = arith.select %492, %493, %494 : vector<4x256xi1>, vector<4x256xf32>
    %496 = arith.truncf %495 : vector<4x256xf32> to vector<4x256xbf16>
    %c8_265 = arith.constant 8 : index
    %c0_266 = arith.constant 0 : index
    %c0_267 = arith.constant 0 : index
    %497 = vector.load %arg6[%c8_265, %c0_266, %c0_267] : memref<9x4x4xbf16, #tpu.memory_space<vmem>>, vector<1x4x4xbf16>
    %498 = vector.shape_cast %497 : vector<1x4x4xbf16> to vector<4x4xbf16>
    %cst_268 = arith.constant dense<0.000000e+00> : vector<4x256xf32>
    %499 = tpu.matmul %498, %496, %cst_268 {dimension_numbers = #tpu.dot_dimension_numbers<[1], [0], [0], [1], [0, 0, 1, 1], [], []>} : vector<4x4xbf16>, vector<4x256xbf16>, vector<4x256xf32> -> vector<4x256xf32>
    %500 = arith.addf %473, %499 : vector<4x256xf32>
    %c0_269 = arith.constant 0 : index
    %c0_270 = arith.constant 0 : index
    %501 = vector.load %arg7[%c0_269, %c0_270] : memref<4x1xf32, #tpu.memory_space<vmem>>, vector<4x1xf32>
    %502 = vector.broadcast %501 : vector<4x1xf32> to vector<4x256xf32>
    %503 = arith.addf %500, %502 : vector<4x256xf32>
    %504 = arith.addf %503, %1 : vector<4x256xf32>
    %cst_271 = arith.constant 0.000000e+00 : f32
    %505 = vector.broadcast %cst_271 : f32 to vector<4x256xf32>
    %506 = arith.maximumf %504, %505 : vector<4x256xf32>
    %c0_272 = arith.constant 0 : index
    %c0_273 = arith.constant 0 : index
    %c0_274 = arith.constant 0 : index
    %507 = vector.load %arg8[%c0_272, %c0_273, %c0_274] : memref<1x4x256xf32, #tpu.memory_space<vmem>>, vector<1x4x256xf32>
    %508 = vector.shape_cast %507 : vector<1x4x256xf32> to vector<4x256xf32>
    %509 = vector.shape_cast %506 : vector<4x256xf32> to vector<1x4x256xf32>
    tpu.vector_store %arg8[%c0_272, %c0_273, %c0_274], %509 {strides = array<i32>} : memref<1x4x256xf32, #tpu.memory_space<vmem>>, vector<1x4x256xf32>,
    return
  }
  func.func @transform_0(%arg0: i32) -> (i32, i32, i32) {
    %c0_i32 = arith.constant 0 : i32
    %c0_i32_0 = arith.constant 0 : i32
    %c0_i32_1 = arith.constant 0 : i32
    return %arg0, %c0_i32, %c0_i32_0 : i32, i32, i32
  }
  func.func @transform_1(%arg0: i32) -> (i32, i32) {
    %c0_i32 = arith.constant 0 : i32
    %c0_i32_0 = arith.constant 0 : i32
    %c0_i32_1 = arith.constant 0 : i32
    return %c0_i32, %c0_i32_0 : i32, i32
  }
  func.func @transform_2(%arg0: i32) -> (i32, i32) {
    %c0_i32 = arith.constant 0 : i32
    %c0_i32_0 = arith.constant 0 : i32
    %c0_i32_1 = arith.constant 0 : i32
    return %c0_i32, %c0_i32_0 : i32, i32
  }
  func.func @transform_3(%arg0: i32) -> (i32, i32, i32) {
    %c0_i32 = arith.constant 0 : i32
    %c0_i32_0 = arith.constant 0 : i32
    %c0_i32_1 = arith.constant 0 : i32
    %c0_i32_2 = arith.constant 0 : i32
    return %c0_i32, %c0_i32_0, %c0_i32_1 : i32, i32, i32
  }
  func.func @transform_4(%arg0: i32) -> (i32, i32) {
    %c0_i32 = arith.constant 0 : i32
    %c0_i32_0 = arith.constant 0 : i32
    %c0_i32_1 = arith.constant 0 : i32
    return %c0_i32, %c0_i32_0 : i32, i32
  }
  func.func @transform_5(%arg0: i32) -> (i32, i32, i32) {
    %c0_i32 = arith.constant 0 : i32
    %c0_i32_0 = arith.constant 0 : i32
    %c0_i32_1 = arith.constant 0 : i32
    %c0_i32_2 = arith.constant 0 : i32
    return %c0_i32, %c0_i32_0, %c0_i32_1 : i32, i32, i32
  }
  func.func @transform_6(%arg0: i32) -> (i32, i32) {
    %c0_i32 = arith.constant 0 : i32
    %c0_i32_0 = arith.constant 0 : i32
    %c0_i32_1 = arith.constant 0 : i32
    return %c0_i32, %c0_i32_0 : i32, i32
  }
  func.func @transform_7(%arg0: i32) -> (i32, i32, i32) {
    %c0_i32 = arith.constant 0 : i32
    %c0_i32_0 = arith.constant 0 : i32
    %c0_i32_1 = arith.constant 0 : i32
    return %arg0, %c0_i32, %c0_i32_0 : i32, i32, i32
  }
}

</mosaic_0001>

<bundles_post_ra>
// kernel: basic_block_forward.1
= control target key start
LH: loop header
LB: loop body
LE: loop exit
PB: predicated region body
PF: predicated region fallthrough
CT: control target
= control target key end

     0   :  { %s1868_s24 = smov 0   ;;  %s2262_s0 = inlined_call_operand.vmem [shape: f32[2,4,256], index: 0, kind: input, shape index: {}]   ;;  %s2263_s1 = inlined_call_operand.vmem [shape: s32[4,256], index: 1, kind: input, shape index: {}]   ;;  %s2264_s2 = inlined_call_operand.vmem [shape: s32[4,256], index: 2, kind: input, shape index: {}]   ;;  %s2265_s3 = inlined_call_operand.vmem [shape: bf16[9,4,4], index: 3, kind: input, shape index: {}]   ;;  %s2266_s4 = inlined_call_operand.vmem [shape: f32[4,1], index: 4, kind: input, shape index: {}]   ;;  %s2267_s5 = inlined_call_operand.vmem [shape: bf16[9,4,4], index: 5, kind: input, shape index: {}]   ;;  %s2268_s6 = inlined_call_operand.vmem [shape: f32[4,1], index: 6, kind: input, shape index: {}]   ;;  %s2269_s7 = inlined_call_operand.vmem [shape: f32[2,4,256], index: 7, kind: output, shape index: {}]  }
   0x1 LB: > { %s1721_s25 = sadd.s32 4294967295, %s1815_s24   ;;  %p1725_p0 = scmp.ge.s32.totalorder %s1815_s24, 1  ;;  %s1815_s24 = sphi %s1868_s24, %s17_s24  }
   0x2   : > { %p237_p1 = scmp.lt.s32.totalorder %s1815_s24, 3 }
   0x4   : > { %p238_p2 = pnand %p1725_p0, %p237_p1 }
   0x5   : > { %p269_p3 = scmp.lt.s32.totalorder (!%p238_p2), %s1721_s25, 1  ;;  %s1818_s9 = smov (!%p238_p2), 17  }
   0x6   : > { %241 = sbr.rel (%p238_p2) target bundleno = 996 (0x3e4), region = 48  ;;  %s1819_s12 = smov (!%p238_p2), 127  }
   0x7   : > { %s1821_s13 = smov (!%p238_p2), 126   ;;  %s1822_s16 = smov (!%p238_p2), 112  }
   0x8   : > { %s1823_s17 = smov (!%p238_p2), 111   ;;  %s1824_s18 = smov (!%p238_p2), 110  }
   0x9   : > { %s1825_s19 = smov (!%p238_p2), 96   ;;  %s1826_s20 = smov (!%p238_p2), 95  }
   0xa   : > { %s1827_s21 = smov (!%p238_p2), 94  }
   0xb   : > { %vm284_vm0 = vcmask 273408   ;;  %v1817_v0 = vmov 0.0   ;;  %s2388_s25 = smov (!%p269_p3, %s1721_s25), 1  ;;  %v1882_v1 = vld [vmem:[%s2264_s2] sm:$0xff]  ;;  %v2293_v9 = vmov 0  ;;  %vm294_vm13 = vcmask 1043592  }
   0xc   : > { %283 = vst [vmem:[#allocation2] sm:$0xff] %v1817_v0  ;;  %285 = vst.msk [vmem:[#allocation2 + $0x8] sm:$0xf] %vm284_vm0, %v1817_v0  ;;  %s1784_s26 = sshll.u32 %s2388_s25, 3  ;;  %v304_v3 = vadd.s32 4294967295, %v1882_v1  ;;  %v281_v4 = vld [vmem:[%s2263_s1] sm:$0xff] }
   0xd   : > { %s1889_s8 = scalar_lea.vmem %s2262_s0, %s1784_s26  ;;  %vm524_vm1 = vcmp.ge.s32.totalorder %v281_v4, 0  ;;  %vm525_vm2 = vcmp.lt.s32.totalorder %v281_v4, 16  ;;  %v755_v5 = vadd.s32 1, %v281_v4  ;;  %v300_v10 = vadd.s32 4294967295, %v281_v4  ;;  %v316_v26 = vld [vmem:[%s2265_s3] sm:$0x3] }
   0xe   : > { %v280_v2 = vld [vmem:[%s1889_s8] sm:$0xff]  ;;  %vm305_vm3 = vcmp.ge.s32.totalorder %v304_v3, 0  ;;  %vm1897_vm4 = vmand %vm524_vm1, %vm525_vm2  ;;  %vm307_vm8 = vcmp.lt.s32.totalorder %v304_v3, 16  ;;  %vm295_vm14 = vcmask 1047556   ;;  %vm2271_vm15 = vcmask 138240  }
   0xf   : > { %287 = vrot.lane.b32.xlu0 %v280_v2, %s1818_s9  ;;  %vm527_vm5 = vmand %vm1897_vm4, %vm305_vm3  ;;  %vm756_vm6 = vcmp.ge.s32.totalorder %v755_v5, 0  ;;  %vm757_vm7 = vcmp.lt.s32.totalorder %v755_v5, 16  ;;  %vm2270_vm0 = vcmask 134144   ;;  %vm301_vm1 = vcmp.ge.s32.totalorder %v300_v10, 0  ;;  %v987_v33 = vld [vmem:[%s2266_s4] sm:$0xf] }
  0x10   : > { %vm1905_vm9 = vmand %vm527_vm5, %vm307_vm8  ;;  %vm302_vm2 = vcmp.lt.s32.totalorder %v300_v10, 16  ;;  %v1820_v22 = vmov 0   ;;  %v1974_v34 = vadd.s32 1, %v1882_v1  ;;  %v1730_v63 = vld [vmem:[%s2265_s3 + $0x2] sm:$0x3] }
  0x11   : > { %vm1909_vm10 = vmand %vm756_vm6, %vm757_vm7  ;;  %386 = vmatprep.mubr.bf16.mxu0 %v1820_v22  ;;  %436 = vmatprep.mubr.bf16.mxu1 %v1820_v22 }
  0x12   : > { %vm759_vm11 = vmand %vm1909_vm10, %vm305_vm3  ;;  %1806 = vset.pattern.permute.xlu0 %v1820_v22  ;;  %1805 = vset.pattern.permute.xlu1 %v1820_v22 }
  0x13   : > { %vm1917_vm12 = vmand %vm759_vm11, %vm307_vm8 }
  0x14   : > { %v2294_v9 = vsel %vm1917_vm12, 4294967295, %v2293_v9  ;;  %vm1921_vm5 = vmor %vm295_vm14, %vm294_vm13  ;;  %vm2284_vm13 = vcmask 1041408  }
  0x15   : > { %vm1927_vm6 = vmand %vm301_vm1, %vm302_vm2  ;;  %vm2274_vm1 = vcmp.lt.s32.totalorder %v1882_v1, 16  ;;  %vm2278_vm2 = vcmp.ge.s32.totalorder %v1974_v34, 0 }
  0x16   : > { %vm306_vm7 = vmand %vm1927_vm6, %vm305_vm3  ;;  %vm2272_vm3 = vcmask 31744  }
  0x17   : > { %vm1937_vm11 = vmand %vm306_vm7, %vm307_vm8  ;;  %vm2273_vm8 = vcmp.ge.s32.totalorder %v1882_v1, 0  ;;  %vm2280_vm7 = vcmask 1043456  }
  0x18   : > { %vm318_vm14 = vmand %vm1927_vm6, %vm2273_vm8  ;;  %vm2277_vm8 = vcmp.lt.s32.totalorder %v1974_v34, 16 }
  0x81   : > { %v288_v11 = vpop.permute.xlu0 %287 }
  0x82   : > { %v289_v13 = vrot.slane %v288_v11, 4 }
  0x84   : > { %v291_v14 = vsel %vm2271_vm15, %v289_v13, %v288_v11  ;;  %299 = vst.msk [vmem:[#allocation2 + $0x8] sm:$0xf] %vm2270_vm0, %v289_v13  ;;  %vm2275_vm0 = vcmask 1039360   ;;  %vm1985_vm15 = vmand %vm318_vm14, %vm2274_vm1  ;;  %vm2276_vm14 = vcmask 1031168  }
  0x85   : > { %297 = vst.msk [vmem:[#allocation2] sm:$0xff] %vm1921_vm5, %v291_v14 }
  0x8b   : > { %v321_v17 = vld [vmem:[#allocation2 + $0x8] sm:$0xf] }
  0x8c   : > { %326 = vrot.lane.b32.xlu1 %v321_v17, %s1819_s12  ;;  %v309_v18 = vld [vmem:[#allocation2] sm:$0xff]  ;;  %v451_v23 = vld [vmem:[#allocation2 + $0x8] sm:$0xf] }
  0x8d   : > { %324 = vrot.lane.b32.xlu0 %v309_v18, %s1819_s12  ;;  %v310_v19 = vsel %vm1937_vm11, %v309_v18, 0.0  ;;  %v530_v27 = vld [vmem:[#allocation2 + $0x8] sm:$0xf] }
  0x8e   : > { %v312_v20 = vcombine.high %v310_v19, %v310_v19  ;;  %v314_v21 = vpack.c.bf16 %v310_v19, %v310_v19  ;;  %v606_v28 = vld [vmem:[#allocation2 + $0x8] sm:$0xf] }
  0x8f   : > { %v682_v29 = vld [vmem:[#allocation2 + $0x8] sm:$0xf] }
  0x90   : > { %454 = vrot.lane.b32.xlu1 %v309_v18, %s1821_s13  ;;  %v315_v24 = vpack.c.bf16 %v312_v20, %v312_v20  ;;  %v399_v25 = vsel %vm2284_vm13, %v314_v21, 0  ;;  %v762_v30 = vld [vmem:[#allocation2 + $0x8] sm:$0xf] }
  0x91   : > { %456 = vrot.lane.b32.xlu0 %v451_v23, %s1821_s13  ;;  %v838_v31 = vld [vmem:[#allocation2 + $0x8] sm:$0xf] }
  0x92   : > { %1733 = vmatprep.subr.msk.bf16.mxu1 %vm2284_vm13, %v315_v24  ;;  %v914_v32 = vld [vmem:[#allocation2 + $0x8] sm:$0xf] }
  0x93   : > { %419 = vmatpush1.bf16.msra.mxu1 %v399_v25 }
  0x94   : > { %533 = vrot.lane.b32.xlu1 %v309_v18, %s1822_s16 }
  0x95   : > { %535 = vrot.lane.b32.xlu0 %v530_v27, %s1822_s16 }
  0x96   : > { %1734 = vmatmul.mubr.msk.bf16.vlgmr.msra.gmra.mxu1 %vm2272_vm3, %v316_v26  ;;  %vm447_vm3 = vmand %vm1927_vm6, %vm2278_vm2  ;;  %vm2279_vm6 = vcmask 916480   ;;  %vm2309_vm2 = vcmask 31744   ;;  %v2312_v26 = vmov 0 }
  0x97   : > { %592 = vmatprep.mubr.bf16.mxu1 %v1820_v22  ;;  %vm2000_vm1 = vmand %vm447_vm3, %vm2277_vm8  ;;  %vm2305_vm3 = vcmp.ge.s32.totalorder %v1882_v1, 0 }
  0x98   : > { %609 = vrot.lane.b32.xlu1 %v309_v18, %s1823_s17 }
  0x99   : > { %611 = vrot.lane.b32.xlu0 %v606_v28, %s1823_s17 }
  0x9c   : > { %685 = vrot.lane.b32.xlu1 %v309_v18, %s1824_s18 }
  0x9d   : > { %687 = vrot.lane.b32.xlu0 %v682_v29, %s1824_s18 }
  0xa0   : > { %765 = vrot.lane.b32.xlu1 %v309_v18, %s1825_s19 }
  0xa1   : > { %767 = vrot.lane.b32.xlu0 %v762_v30, %s1825_s19  ;;  %v1735_v30 = vld [vmem:[%s2265_s3 + $0x4] sm:$0x3] }
  0xa4   : > { %841 = vrot.lane.b32.xlu1 %v309_v18, %s1826_s20 }
  0xa5   : > { %843 = vrot.lane.b32.xlu0 %v838_v31, %s1826_s20  ;;  %v1738_v31 = vld [vmem:[%s2265_s3 + $0x6] sm:$0x3] }
  0xa8   : > { %917 = vrot.lane.b32.xlu1 %v309_v18, %s1827_s21 }
  0xa9   : > { %919 = vrot.lane.b32.xlu0 %v914_v32, %s1827_s21 }
  0xac   : > { %990 = vperm.xlu1 %1805, %v987_v33  }
  0xfe   : > { %v327_v35 = vpop.permute.xlu1 %326 }
  0xff   : > { %v329_v36 = vrot.slane %v327_v35, 4  ;;  %v325_v37 = vpop.permute.xlu0 %324 }
 0x100   : > { %v328_v38 = vrot.slane %v325_v37, 4 }
 0x102   : > { %v331_v40 = vsel %vm2280_vm7, %v328_v38, %v329_v36  ;;  %v455_v41 = vpop.permute.xlu1 %454 }
 0x103   : > { %v333_v42 = vsel %vm2275_vm0, %v325_v37, %v331_v40  ;;  %v458_v43 = vrot.slane %v455_v41, 4  ;;  %v457_v44 = vpop.permute.xlu0 %456  ;;  %vm603_vm0 = vmand %vm1897_vm4, %vm2305_vm3  ;;  %vm2306_vm3 = vcmp.lt.s32.totalorder %v1882_v1, 16 }
 0x104   : > { %v335_v45 = vsel %vm1985_vm15, %v333_v42, 0.0  ;;  %v459_v46 = vrot.slane %v457_v44, 4  ;;  %vm2023_vm8 = vmand %vm603_vm0, %vm2306_vm3  ;;  %vm2311_vm3 = vcmp.lt.s32.totalorder %v1974_v34, 16 }
 0x105   : > { %v337_v48 = vcombine.high %v335_v45, %v335_v45  ;;  %v339_v49 = vpack.c.bf16 %v335_v45, %v335_v45 }
 0x106   : > { %v460_v50 = vsel %vm2280_vm7, %v458_v43, %v459_v46  ;;  %v534_v51 = vpop.permute.xlu1 %533 }
 0x107   : > { %v462_v52 = vsel %vm2276_vm14, %v455_v41, %v460_v50  ;;  %v537_v53 = vrot.slane %v534_v51, 4  ;;  %v536_v54 = vpop.permute.xlu0 %535  ;;  %v340_v55 = vpack.c.bf16 %v337_v48, %v337_v48  ;;  %v349_v58 = vsel %vm2284_vm13, %v339_v49, 0 }
 0x108   : > { %v464_v56 = vsel %vm2000_vm1, %v462_v52, 0.0  ;;  %v538_v57 = vrot.slane %v536_v54, 4  ;;  %vm2281_vm14 = vcmask 908288  }
 0x109   : > { %1731 = vmatprep.subr.msk.bf16.mxu0 %vm2284_vm13, %v340_v55  ;;  %v466_v59 = vcombine.high %v464_v56, %v464_v56  ;;  %v468_v60 = vpack.c.bf16 %v464_v56, %v464_v56 }
 0x10a   : > { %v539_v61 = vsel %vm2280_vm7, %v537_v53, %v538_v57  ;;  %v610_v62 = vpop.permute.xlu1 %609  ;;  %369 = vmatpush1.bf16.msra.mxu0 %v349_v58 }
 0x10b   : > { %v541_v0 = vsel %vm2279_vm6, %v534_v51, %v539_v61  ;;  %v613_v2 = vrot.slane %v610_v62, 4  ;;  %v612_v3 = vpop.permute.xlu0 %611  ;;  %v469_v4 = vpack.c.bf16 %v466_v59, %v466_v59  ;;  %v476_v13 = vsel %vm2284_vm13, %v468_v60, 0  ;;  %v1744_v59 = vld [vmem:[%s2265_s3 + $0xa] sm:$0x3] }
 0x10c   : > { %v543_v5 = vsel %vm1905_vm9, %v541_v0, 0.0  ;;  %v614_v10 = vrot.slane %v612_v3, 4  ;;  %vm2310_vm6 = vcmp.ge.s32.totalorder %v1974_v34, 0 }
 0x10d   : > { %1732 = vmatmul.mubr.msk.bf16.vlgmr.msra.gmra.mxu0 %vm2309_vm2, %v1730_v63  ;;  %1736 = vmatprep.subr.msk.bf16.mxu0 %vm2284_vm13, %v469_v4  ;;  %v545_v14 = vcombine.high %v543_v5, %v543_v5  ;;  %v547_v15 = vpack.c.bf16 %v543_v5, %v543_v5  ;;  %vm679_vm0 = vmand %vm1897_vm4, %vm2310_vm6  ;;  %vm2282_vm2 = vcmask 900096   ;;  %vm2314_vm4 = vcmask 1043456  }
 0x10e   : > { %v615_v17 = vsel %vm2280_vm7, %v613_v2, %v614_v10  ;;  %v686_v18 = vpop.permute.xlu1 %685  ;;  %496 = vmatpush1.bf16.msra.mxu0 %v476_v13  ;;  %513 = vmatprep.mubr.bf16.mxu0 %v1820_v22  ;;  %vm2041_vm7 = vmand %vm679_vm0, %vm2311_vm3  ;;  %vm2283_vm6 = vcmask 785408   ;;  %vm2315_vm0 = vcmask 31744  }
 0x10f   : > { %v617_v19 = vsel %vm2281_vm14, %v610_v62, %v615_v17  ;;  %v689_v20 = vrot.slane %v686_v18, 4  ;;  %v688_v21 = vpop.permute.xlu0 %687  ;;  %v548_v23 = vpack.c.bf16 %v545_v14, %v545_v14  ;;  %v2313_v26 = vsel %vm2041_vm7, 4294967295, %v2312_v26  ;;  %vm2316_vm3 = vmmov %vm2315_vm0 }
 0x110   : > { %v619_v24 = vsel %vm2023_vm8, %v617_v19, 0.0  ;;  %v690_v25 = vrot.slane %v688_v21, 4  ;;  %v555_v6 = vsel %vm2284_vm13, %v547_v15, 0  ;;  %v1747_v19 = vld [vmem:[%s2265_s3 + $0xc] sm:$0x3] }
 0x111   : > { %1739 = vmatprep.subr.msk.bf16.mxu1 %vm2284_vm13, %v548_v23  ;;  %v621_v27 = vcombine.high %v619_v24, %v619_v24  ;;  %v623_v32 = vpack.c.bf16 %v619_v24, %v619_v24 }
 0x112   : > { %v691_v28 = vsel %vm2314_vm4, %v689_v20, %v690_v25  ;;  %v766_v29 = vpop.permute.xlu1 %765  ;;  %575 = vmatpush1.bf16.msra.mxu1 %v555_v6  ;;  %vm2317_vm4 = vcmp.ge.s32.totalorder %v1882_v1, 0  ;;  %v1750_v20 = vld [vmem:[%s2265_s3 + $0xe] sm:$0x3]  ;;  %v1753_v25 = vld [vmem:[%s2265_s3 + $0x10] sm:$0x3] }
 0x113   : > { %v693_v33 = vsel %vm2282_vm2, %v686_v18, %v691_v28  ;;  %v769_v35 = vrot.slane %v766_v29, 4  ;;  %v768_v36 = vpop.permute.xlu0 %767  ;;  %v624_v37 = vpack.c.bf16 %v621_v27, %v621_v27  ;;  %vm2063_vm14 = vmand %vm1909_vm10, %vm2317_vm4  ;;  %vm2320_vm2 = vcmask 1043456  }
 0x114   : > { %v695_v38 = vsel %vm2041_vm7, %v693_v33, 0.0  ;;  %v770_v40 = vrot.slane %v768_v36, 4  ;;  %v631_v46 = vsel %vm2284_vm13, %v623_v32, 0  ;;  %vm2324_vm4 = vcmask 1043456  }
 0x115   : > { %1737 = vmatmul.mubr.msk.bf16.vlgmr.msra.gmra.mxu0 %vm2315_vm0, %v1735_v30  ;;  %1740 = vmatmul.mubr.msk.bf16.vlgmr.msra.gmra.mxu1 %vm2316_vm3, %v1738_v31  ;;  %v697_v41 = vcombine.high %v695_v38, %v695_v38  ;;  %v699_v42 = vpack.c.bf16 %v695_v38, %v695_v38 }
 0x116   : > { %v771_v44 = vsel %vm2320_vm2, %v769_v35, %v770_v40  ;;  %1742 = vmatprep.subr.msk.bf16.mxu0 %vm2284_vm13, %v624_v37  ;;  %v842_v45 = vpop.permute.xlu1 %841  ;;  %668 = vmatprep.mubr.bf16.mxu0 %v1820_v22  ;;  %vm2321_vm2 = vcmp.lt.s32.totalorder %v1882_v1, 16  ;;  %v1741_v1 = vld [vmem:[%s2265_s3 + $0x8] sm:$0x3] }
 0x117   : > { %v773_v48 = vsel %vm2283_vm6, %v766_v29, %v771_v44  ;;  %v845_v49 = vrot.slane %v842_v45, 4  ;;  %651 = vmatpush1.bf16.msra.mxu0 %v631_v46  ;;  %v844_v50 = vpop.permute.xlu0 %843  ;;  %v700_v51 = vpack.c.bf16 %v697_v41, %v697_v41  ;;  %744 = vmatprep.mubr.bf16.mxu1 %v1820_v22  ;;  %vm2079_vm3 = vmand %vm2063_vm14, %vm2321_vm2  ;;  %v707_v55 = vsel %vm2284_vm13, %v699_v42, 0 }
 0x118   : > { %v775_v52 = vsel %vm1917_vm12, %v773_v48, 0.0  ;;  %v846_v53 = vrot.slane %v844_v50, 4  ;;  %vm2325_vm6 = vcmp.ge.s32.totalorder %v1974_v34, 0  ;;  %vm2326_vm14 = vcmask 777216  }
 0x119   : > { %1745 = vmatprep.subr.msk.bf16.mxu1 %vm2284_vm13, %v700_v51  ;;  %v777_v56 = vcombine.high %v775_v52, %v775_v52  ;;  %vm911_vm0 = vmand %vm1909_vm10, %vm2325_vm6  ;;  %v779_v60 = vpack.c.bf16 %v775_v52, %v775_v52  ;;  %vm924_vm2 = vcmask 769024   ;;  %vm2327_vm10 = vcmp.lt.s32.totalorder %v1974_v34, 16 }
 0x11a   : > { %v847_v57 = vsel %vm2324_vm4, %v845_v49, %v846_v53  ;;  %v918_v58 = vpop.permute.xlu1 %917  ;;  %727 = vmatpush1.bf16.msra.mxu1 %v707_v55  ;;  %vm2101_vm6 = vmand %vm911_vm0, %vm2327_vm10  ;;  %vm2330_vm4 = vcmask 31744   ;;  %vm2333_vm12 = vcmask 1041408  }
 0x11b   : > { %v849_v61 = vsel %vm2326_vm14, %v842_v45, %v847_v57  ;;  %v921_v62 = vrot.slane %v918_v58, 4  ;;  %v920_v63 = vpop.permute.xlu0 %919  ;;  %v780_v0 = vpack.c.bf16 %v777_v56, %v777_v56  ;;  %vm2331_vm13 = vmmov %vm2330_vm4  ;;  %vm2332_vm14 = vcmask 1043456  }
 0x11c   : > { %v851_v2 = vsel %vm2079_vm3, %v849_v61, 0.0  ;;  %v922_v8 = vrot.slane %v920_v63, 4  ;;  %vm2334_vm7 = vmmov %vm2333_vm12 }
 0x11d   : > { %1743 = vmatmul.mubr.msk.bf16.vlgmr.msra.gmra.mxu0 %vm2330_vm4, %v1741_v1  ;;  %1746 = vmatmul.mubr.msk.bf16.vlgmr.msra.gmra.mxu1 %vm2331_vm13, %v1744_v59  ;;  %v853_v4 = vcombine.high %v851_v2, %v851_v2  ;;  %v855_v5 = vpack.c.bf16 %v851_v2, %v851_v2  ;;  %v787_v13 = vsel %vm2334_vm7, %v779_v60, 0  ;;  %vm2335_vm13 = vmmov %vm2334_vm7 }
 0x11e   : > { %v923_v10 = vsel %vm2332_vm14, %v921_v62, %v922_v8  ;;  %1748 = vmatprep.subr.msk.bf16.mxu0 %vm2333_vm12, %v780_v0  ;;  %824 = vmatprep.mubr.bf16.mxu0 %v1820_v22  ;;  %vm2336_vm0 = vmmov %vm2334_vm7 }
 0x11f   : > { %v925_v34 = vsel %vm924_vm2, %v918_v58, %v923_v10  ;;  %807 = vmatpush1.bf16.msra.mxu0 %v787_v13  ;;  %v856_v14 = vpack.c.bf16 %v853_v4, %v853_v4  ;;  %900 = vmatprep.mubr.bf16.mxu1 %v1820_v22  ;;  %v863_v17 = vsel %vm2336_vm0, %v855_v5, 0  ;;  %vm2337_vm12 = vmmov %vm2330_vm4 }
 0x120   : > { %v927_v15 = vsel %vm2101_vm6, %v925_v34, 0.0  ;;  %vm2338_vm7 = vmmov %vm2330_vm4 }
 0x121   : > { %1751 = vmatprep.subr.msk.bf16.mxu1 %vm2335_vm13, %v856_v14  ;;  %v929_v18 = vcombine.high %v927_v15, %v927_v15  ;;  %v931_v21 = vpack.c.bf16 %v927_v15, %v927_v15  ;;  %vm2339_vm10 = vmmov %vm2336_vm0  ;;  %vm2342_vm13 = vcmask 138240  }
 0x122   : > { %883 = vmatpush1.bf16.msra.mxu1 %v863_v17  ;;  %vm2340_vm4 = vmmov %vm2336_vm0  ;;  %vm2343_vm0 = vcmask 134144  }
 0x123   : > { %v932_v23 = vpack.c.bf16 %v929_v18, %v929_v18  ;;  %v939_v24 = vsel %vm2340_vm4, %v931_v21, 0  ;;  %vm2341_vm14 = vmmov %vm2338_vm7 }
 0x125   : > { %1749 = vmatmul.mubr.msk.bf16.vlgmr.msra.gmra.mxu0 %vm2337_vm12, %v1747_v19  ;;  %1752 = vmatmul.mubr.msk.bf16.vlgmr.msra.gmra.mxu1 %vm2338_vm7, %v1750_v20  ;;  %vm2344_vm12 = vmmov %vm2340_vm4 }
 0x126   : > { %1754 = vmatprep.subr.msk.bf16.mxu0 %vm2339_vm10, %v932_v23  ;;  %976 = vmatprep.mubr.bf16.mxu0 %v1820_v22  ;;  %vm2348_vm10 = vcmask 1039360  }
 0x127   : > { %959 = vmatpush1.bf16.msra.mxu0 %v939_v24  ;;  %1077 = vmatprep.mubr.bf16.mxu1 %v1820_v22  ;;  %v991_v18 = vpop.permute.xlu1 %990 }
 0x12d   : > { %1755 = vmatmul.mubr.msk.bf16.vlgmr.msra.gmra.mxu0 %vm2341_vm14, %v1753_v25  ;;  %vm2350_vm14 = vcmask 1031168  }
 0x12e   : > { %1127 = vmatprep.mubr.bf16.mxu0 %v1820_v22 }
 0x156   : > { %v438_v6 = vpop.f32.mrf.mxu1 }
 0x158   : > { %v440_v27 = vpop.f32.mrf.mxu1 }
 0x15a   : > { %v442_v28 = vpop.f32.mrf.mxu1 }
 0x15c   : > { %v443_v29 = vpop.f32.mrf.mxu1 }
 0x1cd   : > { %v388_v30 = vpop.f32.mrf.mxu0 }
 0x1ce   : > { %v439_v42 = vadd.f32 %v438_v6, %v388_v30 }
 0x1cf   : > { %v390_v31 = vpop.f32.mrf.mxu0 }
 0x1d0   : > { %v441_v45 = vadd.f32 %v440_v27, %v390_v31 }
 0x1d1   : > { %v392_v32 = vpop.f32.mrf.mxu0 }
 0x1d3   : > { %v393_v33 = vpop.f32.mrf.mxu0 }
 0x1d5   : > { %v515_v35 = vpop.f32.mrf.mxu0  ;;  %v594_v36 = vpop.f32.mrf.mxu1 }
 0x1d6   : > { %v522_v46 = vadd.f32 %v515_v35, %v439_v42 }
 0x1d7   : > { %v517_v37 = vpop.f32.mrf.mxu0  ;;  %v596_v38 = vpop.f32.mrf.mxu1 }
 0x1d8   : > { %v523_v50 = vadd.f32 %v517_v37, %v441_v45  ;;  %v601_v53 = vadd.f32 %v594_v36, %v522_v46 }
 0x1d9   : > { %v519_v40 = vpop.f32.mrf.mxu0  ;;  %v598_v41 = vpop.f32.mrf.mxu1 }
 0x1da   : > { %v602_v57 = vadd.f32 %v596_v38, %v523_v50  ;;  %v1647_v50 = vld [vmem:[%s2268_s6] sm:$0xf] }
 0x1db   : > { %v520_v43 = vpop.f32.mrf.mxu0  ;;  %v599_v44 = vpop.f32.mrf.mxu1 }
 0x1dc   : > { %v1015_v44 = vld [vmem:[%s2267_s5] sm:$0x3] }
 0x1dd   : > { %v670_v48 = vpop.f32.mrf.mxu0  ;;  %v746_v49 = vpop.f32.mrf.mxu1 }
 0x1de   : > { %v677_v58 = vadd.f32 %v670_v48, %v601_v53 }
 0x1df   : > { %v672_v51 = vpop.f32.mrf.mxu0  ;;  %v748_v52 = vpop.f32.mrf.mxu1 }
 0x1e0   : > { %v678_v60 = vadd.f32 %v672_v51, %v602_v57  ;;  %v753_v63 = vadd.f32 %v746_v49, %v677_v58 }
 0x1e1   : > { %v674_v55 = vpop.f32.mrf.mxu0  ;;  %v750_v56 = vpop.f32.mrf.mxu1 }
 0x1e2   : > { %v754_v8 = vadd.f32 %v748_v52, %v678_v60 }
 0x1e3   : > { %v675_v1 = vpop.f32.mrf.mxu0  ;;  %v751_v59 = vpop.f32.mrf.mxu1 }
 0x1e5   : > { %v826_v61 = vpop.f32.mrf.mxu0  ;;  %v902_v62 = vpop.f32.mrf.mxu1 }
 0x1e6   : > { %v833_v4 = vadd.f32 %v826_v61, %v753_v63 }
 0x1e7   : > { %v828_v0 = vpop.f32.mrf.mxu0  ;;  %v904_v2 = vpop.f32.mrf.mxu1 }
 0x1e8   : > { %v834_v13 = vadd.f32 %v828_v0, %v754_v8  ;;  %v909_v15 = vadd.f32 %v902_v62, %v833_v4 }
 0x1e9   : > { %v830_v5 = vpop.f32.mrf.mxu0  ;;  %v906_v10 = vpop.f32.mrf.mxu1 }
 0x1ea   : > { %v910_v19 = vadd.f32 %v904_v2, %v834_v13 }
 0x1eb   : > { %v831_v34 = vpop.f32.mrf.mxu0  ;;  %v907_v14 = vpop.f32.mrf.mxu1 }
 0x1ed   : > { %v978_v17 = vpop.f32.mrf.mxu0 }
 0x1ee   : > { %v985_v20 = vadd.f32 %v978_v17, %v909_v15 }
 0x1ef   : > { %v980_v21 = vpop.f32.mrf.mxu0 }
 0x1f0   : > { %v993_v23 = vadd.f32 %v991_v18, %v985_v20  ;;  %v986_v24 = vadd.f32 %v980_v21, %v910_v19  ;;  %v1756_v19 = vld [vmem:[%s2267_s5 + $0x2] sm:$0x3] }
 0x1f1   : > { %v982_v25 = vpop.f32.mrf.mxu0 }
 0x1f2   : > { %v994_v6 = vadd.f32 %v991_v18, %v986_v24  ;;  %v995_v28 = vmax.f32 %v993_v23, 0.0 }
 0x1f3   : > { %v983_v27 = vpop.f32.mrf.mxu0 }
 0x1f4   : > { %v996_v29 = vmax.f32 %v994_v6, 0.0 }
 0x1f6   : > { %v999_v30 = vcombine.low %v995_v28, %v996_v29 }
 0x1f8   : > { %1000 = vrot.lane.b32.xlu0 %v999_v30, %s1818_s9 }
 0x26a   : > { %v1001_v31 = vpop.permute.xlu0 %1000 }
 0x26b   : > { %v1002_v32 = vrot.slane %v1001_v31, 4 }
 0x26d   : > { %v1003_v33 = vsel %vm2342_vm13, %v1002_v32, %v1001_v31  ;;  %1007 = vst.msk [vmem:[#allocation2 + $0x8] sm:$0xf] %vm2343_vm0, %v1002_v32 }
 0x26e   : > { %1006 = vst.msk [vmem:[#allocation2] sm:$0xff] %vm1921_vm5, %v1003_v33  ;;  %vm2345_vm5 = vmmov %vm2340_vm4 }
 0x26f   : > { %vm2351_vm13 = vmmov %vm2345_vm5 }
 0x274   : > { %v1016_v35 = vld [vmem:[#allocation2 + $0x8] sm:$0xf] }
 0x275   : > { %1021 = vrot.lane.b32.xlu0 %v1016_v35, %s1819_s12  ;;  %v1008_v36 = vld [vmem:[#allocation2] sm:$0xff]  ;;  %v1137_v41 = vld [vmem:[#allocation2 + $0x8] sm:$0xf] }
 0x276   : > { %1019 = vrot.lane.b32.xlu1 %v1008_v36, %s1819_s12  ;;  %v1009_v37 = vsel %vm1937_vm11, %v1008_v36, 0.0  ;;  %v1210_v43 = vld [vmem:[#allocation2 + $0x8] sm:$0xf]  ;;  %vm2346_vm11 = vmmov %vm2338_vm7  ;;  %vm2347_vm7 = vcmask 1043456  }
 0x277   : > { %v1011_v38 = vcombine.high %v1009_v37, %v1009_v37  ;;  %v1013_v40 = vpack.c.bf16 %v1009_v37, %v1009_v37  ;;  %v1283_v16 = vld [vmem:[#allocation2 + $0x8] sm:$0xf]  ;;  %vm2349_vm4 = vmmov %vm2347_vm7 }
 0x278   : > { %v1356_v45 = vld [vmem:[#allocation2 + $0x8] sm:$0xf]  ;;  %vm2353_vm0 = vmmov %vm2349_vm4 }
 0x279   : > { %v1014_v42 = vpack.c.bf16 %v1011_v38, %v1011_v38  ;;  %1142 = vrot.lane.b32.xlu0 %v1137_v41, %s1821_s13  ;;  %v1090_v12 = vsel %vm2345_vm5, %v1013_v40, 0  ;;  %v1429_v46 = vld [vmem:[#allocation2 + $0x8] sm:$0xf] }
 0x27a   : > { %1140 = vrot.lane.b32.xlu1 %v1008_v36, %s1821_s13  ;;  %v1502_v48 = vld [vmem:[#allocation2 + $0x8] sm:$0xf]  ;;  %s278_s13 = scalar_lea.vmem %s2269_s7, %s1784_s26 }
 0x27b   : > { %1759 = vmatprep.subr.msk.bf16.mxu0 %vm2344_vm12, %v1014_v42  ;;  %v1575_v49 = vld [vmem:[#allocation2 + $0x8] sm:$0xf]  ;;  %vm2354_vm12 = vcmask 916480  }
 0x27c   : > { %1110 = vmatpush1.bf16.msra.mxu0 %v1090_v12  ;;  %v1761_v12 = vld [vmem:[%s2267_s5 + $0x4] sm:$0x3] }
 0x27d   : > { %1215 = vrot.lane.b32.xlu0 %v1210_v43, %s1822_s16 }
 0x27e   : > { %1213 = vrot.lane.b32.xlu1 %v1008_v36, %s1822_s16 }
 0x27f   : > { %1760 = vmatmul.mubr.msk.bf16.vlgmr.msra.gmra.mxu0 %vm2346_vm11, %v1015_v44 }
 0x280   : > { %1271 = vmatprep.mubr.bf16.mxu0 %v1820_v22 }
 0x281   : > { %1288 = vrot.lane.b32.xlu0 %v1283_v16, %s1823_s17 }
 0x282   : > { %1286 = vrot.lane.b32.xlu1 %v1008_v36, %s1823_s17 }
 0x285   : > { %1361 = vrot.lane.b32.xlu0 %v1356_v45, %s1824_s18  ;;  %v1764_v45 = vld [vmem:[%s2267_s5 + $0x6] sm:$0x3] }
 0x286   : > { %1359 = vrot.lane.b32.xlu1 %v1008_v36, %s1824_s18 }
 0x289   : > { %1434 = vrot.lane.b32.xlu0 %v1429_v46, %s1825_s19 }
 0x28a   : > { %1432 = vrot.lane.b32.xlu1 %v1008_v36, %s1825_s19 }
 0x28d   : > { %1507 = vrot.lane.b32.xlu0 %v1502_v48, %s1826_s20 }
 0x28e   : > { %1505 = vrot.lane.b32.xlu1 %v1008_v36, %s1826_s20 }
 0x291   : > { %1580 = vrot.lane.b32.xlu0 %v1575_v49, %s1827_s21 }
 0x292   : > { %1578 = vrot.lane.b32.xlu1 %v1008_v36, %s1827_s21 }
 0x296   : > { %1650 = vperm.xlu1 %1805, %v1647_v50  }
 0x2e7   : > { %v1022_v51 = vpop.permute.xlu0 %1021 }
 0x2e8   : > { %v1024_v52 = vrot.slane %v1022_v51, 4  ;;  %v1020_v53 = vpop.permute.xlu1 %1019 }
 0x2e9   : > { %v1023_v55 = vrot.slane %v1020_v53, 4 }
 0x2eb   : > { %v1025_v56 = vsel %vm2347_vm7, %v1023_v55, %v1024_v52  ;;  %v1143_v57 = vpop.permute.xlu0 %1142  ;;  %vm2357_vm7 = vmmov %vm2353_vm0 }
 0x2ec   : > { %v1026_v58 = vsel %vm2348_vm10, %v1020_v53, %v1025_v56  ;;  %v1145_v1 = vrot.slane %v1143_v57, 4  ;;  %v1141_v59 = vpop.permute.xlu1 %1140  ;;  %vm2358_vm10 = vcmask 908288  }
 0x2ed   : > { %v1028_v60 = vsel %vm1985_vm15, %v1026_v58, 0.0  ;;  %v1144_v61 = vrot.slane %v1141_v59, 4  ;;  %vm2352_vm15 = vmmov %vm2345_vm5 }
 0x2ee   : > { %v1030_v62 = vcombine.high %v1028_v60, %v1028_v60  ;;  %v1032_v63 = vpack.c.bf16 %v1028_v60, %v1028_v60 }
 0x2ef   : > { %v1146_v0 = vsel %vm2349_vm4, %v1144_v61, %v1145_v1  ;;  %v1216_v2 = vpop.permute.xlu0 %1215  ;;  %vm2360_vm4 = vmmov %vm2345_vm5 }
 0x2f0   : > { %v1033_v8 = vpack.c.bf16 %v1030_v62, %v1030_v62  ;;  %v1147_v4 = vsel %vm2350_vm14, %v1141_v59, %v1146_v0  ;;  %v1218_v5 = vrot.slane %v1216_v2, 4  ;;  %v1214_v10 = vpop.permute.xlu1 %1213  ;;  %v1040_v39 = vsel %vm2352_vm15, %v1032_v63, 0  ;;  %vm2361_vm14 = vmmov %vm2353_vm0  ;;  %v1767_v0 = vld [vmem:[%s2267_s5 + $0x8] sm:$0x3] }
 0x2f1   : > { %v1149_v13 = vsel %vm2000_vm1, %v1147_v4, 0.0  ;;  %v1217_v34 = vrot.slane %v1214_v10, 4  ;;  %vm2355_vm1 = vmmov %vm2346_vm11 }
 0x2f2   : > { %v1151_v14 = vcombine.high %v1149_v13, %v1149_v13  ;;  %v1153_v15 = vpack.c.bf16 %v1149_v13, %v1149_v13  ;;  %1757 = vmatprep.subr.msk.bf16.mxu1 %vm2351_vm13, %v1033_v8  ;;  %vm2356_vm11 = vmmov %vm2345_vm5  ;;  %vm2362_vm13 = vcmask 900096  }
 0x2f3   : > { %v1219_v17 = vsel %vm2353_vm0, %v1217_v34, %v1218_v5  ;;  %v1289_v18 = vpop.permute.xlu0 %1288  ;;  %1060 = vmatpush1.bf16.msra.mxu1 %v1040_v39  ;;  %vm2364_vm15 = vmmov %vm2355_vm1  ;;  %v1770_v5 = vld [vmem:[%s2267_s5 + $0xa] sm:$0x3] }
 0x2f4   : > { %v1154_v20 = vpack.c.bf16 %v1151_v14, %v1151_v14  ;;  %v1220_v21 = vsel %vm2354_vm12, %v1214_v10, %v1219_v17  ;;  %v1291_v47 = vrot.slane %v1289_v18, 4  ;;  %v1287_v23 = vpop.permute.xlu1 %1286  ;;  %v1161_v28 = vsel %vm2356_vm11, %v1153_v15, 0  ;;  %vm2365_vm0 = vmmov %vm2360_vm4 }
 0x2f5   : > { %v1222_v24 = vsel %vm1905_vm9, %v1220_v21, 0.0  ;;  %v1290_v25 = vrot.slane %v1287_v23, 4  ;;  %vm2359_vm9 = vmmov %vm2345_vm5  ;;  %vm2369_vm11 = vcmask 785408  }
 0x2f6   : > { %v1224_v6 = vcombine.high %v1222_v24, %v1222_v24  ;;  %v1226_v27 = vpack.c.bf16 %v1222_v24, %v1222_v24  ;;  %1758 = vmatmul.mubr.msk.bf16.vlgmr.msra.gmra.mxu1 %vm2355_vm1, %v1756_v19  ;;  %1762 = vmatprep.subr.msk.bf16.mxu1 %vm2345_vm5, %v1154_v20  ;;  %vm2366_vm12 = vmmov %vm2365_vm0  ;;  %v1776_v24 = vld [vmem:[%s2267_s5 + $0xe] sm:$0x3] }
 0x2f7   : > { %v1292_v29 = vsel %vm2357_vm7, %v1290_v25, %v1291_v47  ;;  %v1362_v30 = vpop.permute.xlu0 %1361  ;;  %1181 = vmatpush1.bf16.msra.mxu1 %v1161_v28  ;;  %1198 = vmatprep.mubr.bf16.mxu1 %v1820_v22  ;;  %vm2367_vm1 = vmmov %vm2357_vm7  ;;  %vm2370_vm7 = vnez %v2294_v9  ;;  %v1773_v47 = vld [vmem:[%s2267_s5 + $0xc] sm:$0x3]  ;;  %v1779_v25 = vld [vmem:[%s2267_s5 + $0x10] sm:$0x3] }
 0x2f8   : > { %v1227_v31 = vpack.c.bf16 %v1224_v6, %v1224_v6  ;;  %v1293_v32 = vsel %vm2358_vm10, %v1287_v23, %v1292_v29  ;;  %v1364_v7 = vrot.slane %v1362_v30, 4  ;;  %v1360_v33 = vpop.permute.xlu1 %1359  ;;  %v1234_v40 = vsel %vm2360_vm4, %v1226_v27, 0  ;;  %vm2368_vm5 = vmmov %vm2364_vm15 }
 0x2f9   : > { %v1295_v35 = vsel %vm2023_vm8, %v1293_v32, 0.0  ;;  %v1363_v36 = vrot.slane %v1360_v33, 4  ;;  %vm2363_vm8 = vnez %v2313_v26  ;;  %vm2371_vm10 = vmmov %vm2365_vm0 }
 0x2fa   : > { %v1297_v37 = vcombine.high %v1295_v35, %v1295_v35  ;;  %v1299_v38 = vpack.c.bf16 %v1295_v35, %v1295_v35  ;;  %1765 = vmatprep.subr.msk.bf16.mxu0 %vm2359_vm9, %v1227_v31  ;;  %vm2372_vm9 = vmmov %vm2365_vm0 }
 0x2fb   : > { %v1365_v41 = vsel %vm2361_vm14, %v1363_v36, %v1364_v7  ;;  %v1435_v42 = vpop.permute.xlu0 %1434  ;;  %1254 = vmatpush1.bf16.msra.mxu0 %v1234_v40  ;;  %vm2373_vm4 = vmmov %vm2367_vm1  ;;  %vm2374_vm14 = vcmask 777216  }
 0x2fc   : > { %v1300_v43 = vpack.c.bf16 %v1297_v37, %v1297_v37  ;;  %v1366_v44 = vsel %vm2362_vm13, %v1360_v33, %v1365_v41  ;;  %v1437_v11 = vrot.slane %v1435_v42, 4  ;;  %v1433_v16 = vpop.permute.xlu1 %1432  ;;  %v1307_v51 = vsel %vm2366_vm12, %v1299_v38, 0  ;;  %vm2375_vm13 = vmmov %vm2368_vm5 }
 0x2fd   : > { %v1368_v46 = vsel %vm2363_vm8, %v1366_v44, 0.0  ;;  %v1436_v48 = vrot.slane %v1433_v16, 4  ;;  %vm2376_vm8 = vmmov %vm2365_vm0 }
 0x2fe   : > { %v1370_v49 = vcombine.high %v1368_v46, %v1368_v46  ;;  %v1372_v50 = vpack.c.bf16 %v1368_v46, %v1368_v46  ;;  %1763 = vmatmul.mubr.msk.bf16.vlgmr.msra.gmra.mxu1 %vm2364_vm15, %v1761_v12  ;;  %1768 = vmatprep.subr.msk.bf16.mxu1 %vm2365_vm0, %v1300_v43  ;;  %vm2377_vm15 = vmmov %vm2365_vm0 }
 0x2ff   : > { %v1438_v52 = vsel %vm2367_vm1, %v1436_v48, %v1437_v11  ;;  %v1508_v53 = vpop.permute.xlu0 %1507  ;;  %1327 = vmatpush1.bf16.msra.mxu1 %v1307_v51  ;;  %1766 = vmatmul.mubr.msk.bf16.vlgmr.msra.gmra.mxu0 %vm2368_vm5, %v1764_v45  ;;  %vm2378_vm0 = vmmov %vm2367_vm1 }
 0x300   : > { %v1373_v55 = vpack.c.bf16 %v1370_v49, %v1370_v49  ;;  %v1439_v56 = vsel %vm2369_vm11, %v1433_v16, %v1438_v52  ;;  %v1510_v26 = vrot.slane %v1508_v53, 4  ;;  %v1506_v57 = vpop.permute.xlu1 %1505  ;;  %1344 = vmatprep.mubr.bf16.mxu1 %v1820_v22  ;;  %1417 = vmatprep.mubr.bf16.mxu0 %v1820_v22  ;;  %v1380_v61 = vsel %vm2372_vm9, %v1372_v50, 0  ;;  %vm2379_vm12 = vmmov %vm2368_vm5 }
 0x301   : > { %v1441_v58 = vsel %vm2370_vm7, %v1439_v56, 0.0  ;;  %v1509_v1 = vrot.slane %v1506_v57, 4 }
 0x302   : > { %v1443_v59 = vcombine.high %v1441_v58, %v1441_v58  ;;  %v1445_v60 = vpack.c.bf16 %v1441_v58, %v1441_v58  ;;  %1771 = vmatprep.subr.msk.bf16.mxu0 %vm2371_vm10, %v1373_v55 }
 0x303   : > { %v1511_v62 = vsel %vm2373_vm4, %v1509_v1, %v1510_v26  ;;  %v1581_v63 = vpop.permute.xlu0 %1580  ;;  %1400 = vmatpush1.bf16.msra.mxu0 %v1380_v61 }
 0x304   : > { %v1446_v2 = vpack.c.bf16 %v1443_v59, %v1443_v59  ;;  %v1512_v8 = vsel %vm2374_vm14, %v1506_v57, %v1511_v62  ;;  %v1583_v9 = vrot.slane %v1581_v63, 4  ;;  %v1579_v4 = vpop.permute.xlu1 %1578  ;;  %v1453_v15 = vsel %vm2377_vm15, %v1445_v60, 0 }
 0x305   : > { %v1514_v10 = vsel %vm2079_vm3, %v1512_v8, 0.0  ;;  %v1582_v13 = vrot.slane %v1579_v4, 4  ;;  %vm2380_vm3 = vmmov %vm2376_vm8 }
 0x306   : > { %v1516_v34 = vcombine.high %v1514_v10, %v1514_v10  ;;  %v1518_v14 = vpack.c.bf16 %v1514_v10, %v1514_v10  ;;  %1769 = vmatmul.mubr.msk.bf16.vlgmr.msra.gmra.mxu1 %vm2375_vm13, %v1767_v0  ;;  %1774 = vmatprep.subr.msk.bf16.mxu1 %vm2376_vm8, %v1446_v2  ;;  %vm2381_vm1 = vmmov %vm2380_vm3 }
 0x307   : > { %v1584_v39 = vsel %vm2378_vm0, %v1582_v13, %v1583_v9  ;;  %1473 = vmatpush1.bf16.msra.mxu1 %v1453_v15  ;;  %1772 = vmatmul.mubr.msk.bf16.vlgmr.msra.gmra.mxu0 %vm2379_vm12, %v1770_v5 }
 0x308   : > { %v1519_v17 = vpack.c.bf16 %v1516_v34, %v1516_v34  ;;  %v1585_v18 = vsel %vm924_vm2, %v1579_v4, %v1584_v39  ;;  %1490 = vmatprep.mubr.bf16.mxu1 %v1820_v22  ;;  %1563 = vmatprep.mubr.bf16.mxu0 %v1820_v22  ;;  %v1526_v21 = vsel %vm2381_vm1, %v1518_v14, 0  ;;  %vm2382_vm2 = vmmov %vm2368_vm5  ;;  %v1808_v14 = vld [vmem:[%s1889_s8] sm:$0xff] }
 0x309   : > { %v1587_v54 = vsel %vm2101_vm6, %v1585_v18, 0.0  ;;  %vm2383_vm5 = vmmov %vm2381_vm1  ;;  %v1655_v15 = vcombine.high %v1808_v14, %v1808_v14 }
 0x30a   : > { %v1589_v19 = vcombine.high %v1587_v54, %v1587_v54  ;;  %v1591_v20 = vpack.c.bf16 %v1587_v54, %v1587_v54  ;;  %1777 = vmatprep.subr.msk.bf16.mxu0 %vm2380_vm3, %v1519_v17  ;;  %vm2384_vm6 = vmmov %vm2381_vm1 }
 0x30b   : > { %1546 = vmatpush1.bf16.msra.mxu0 %v1526_v21  ;;  %vm2385_vm11 = vmmov %vm2382_vm2 }
 0x30c   : > { %v1592_v23 = vpack.c.bf16 %v1589_v19, %v1589_v19  ;;  %v1599_v3 = vsel %vm2384_vm6, %v1591_v20, 0  ;;  %vm2386_vm7 = vmmov %vm2382_vm2 }
 0x30e   : > { %1775 = vmatmul.mubr.msk.bf16.vlgmr.msra.gmra.mxu1 %vm2382_vm2, %v1773_v47  ;;  %1780 = vmatprep.subr.msk.bf16.mxu1 %vm2383_vm5, %v1592_v23 }
 0x30f   : > { %1619 = vmatpush1.bf16.msra.mxu1 %v1599_v3  ;;  %1778 = vmatmul.mubr.msk.bf16.vlgmr.msra.gmra.mxu0 %vm2385_vm11, %v1776_v24 }
 0x310   : > { %1636 = vmatprep.mubr.bf16.mxu1 %v1820_v22 }
 0x311   : > { %v1651_v13 = vpop.permute.xlu1 %1650 }
 0x316   : > { %1781 = vmatmul.mubr.msk.bf16.vlgmr.msra.gmra.mxu1 %vm2386_vm7, %v1779_v25 }
 0x33f   : > { %v1129_v6 = vpop.f32.mrf.mxu0 }
 0x341   : > { %v1131_v27 = vpop.f32.mrf.mxu0 }
 0x343   : > { %v1133_v28 = vpop.f32.mrf.mxu0 }
 0x345   : > { %v1134_v29 = vpop.f32.mrf.mxu0 }
 0x3b6   : > { %v1079_v30 = vpop.f32.mrf.mxu1 }
 0x3b7   : > { %v1130_v22 = vadd.f32 %v1129_v6, %v1079_v30 }
 0x3b8   : > { %v1081_v31 = vpop.f32.mrf.mxu1 }
 0x3b9   : > { %v1132_v42 = vadd.f32 %v1131_v27, %v1081_v31 }
 0x3ba   : > { %v1083_v32 = vpop.f32.mrf.mxu1 }
 0x3bc   : > { %v1084_v7 = vpop.f32.mrf.mxu1 }
 0x3be   : > { %v1200_v33 = vpop.f32.mrf.mxu1 }
 0x3bf   : > { %v1273_v35 = vpop.f32.mrf.mxu0  ;;  %v1207_v12 = vadd.f32 %v1200_v33, %v1130_v22 }
 0x3c0   : > { %v1202_v36 = vpop.f32.mrf.mxu1 }
 0x3c1   : > { %v1275_v37 = vpop.f32.mrf.mxu0  ;;  %v1208_v11 = vadd.f32 %v1202_v36, %v1132_v42  ;;  %v1280_v46 = vadd.f32 %v1273_v35, %v1207_v12 }
 0x3c2   : > { %v1204_v38 = vpop.f32.mrf.mxu1 }
 0x3c3   : > { %v1277_v40 = vpop.f32.mrf.mxu0  ;;  %v1281_v50 = vadd.f32 %v1275_v37, %v1208_v11 }
 0x3c4   : > { %v1205_v41 = vpop.f32.mrf.mxu1 }
 0x3c5   : > { %v1278_v43 = vpop.f32.mrf.mxu0 }
 0x3c6   : > { %v1346_v44 = vpop.f32.mrf.mxu1 }
 0x3c7   : > { %v1419_v16 = vpop.f32.mrf.mxu0  ;;  %v1353_v51 = vadd.f32 %v1346_v44, %v1280_v46 }
 0x3c8   : > { %v1348_v45 = vpop.f32.mrf.mxu1 }
 0x3c9   : > { %v1421_v48 = vpop.f32.mrf.mxu0  ;;  %v1354_v55 = vadd.f32 %v1348_v45, %v1281_v50  ;;  %v1426_v57 = vadd.f32 %v1419_v16, %v1353_v51 }
 0x3ca   : > { %v1350_v49 = vpop.f32.mrf.mxu1 }
 0x3cb   : > { %v1423_v52 = vpop.f32.mrf.mxu0  ;;  %v1427_v59 = vadd.f32 %v1421_v48, %v1354_v55 }
 0x3cc   : > { %v1351_v53 = vpop.f32.mrf.mxu1 }
 0x3cd   : > { %v1424_v56 = vpop.f32.mrf.mxu0 }
 0x3ce   : > { %v1492_v26 = vpop.f32.mrf.mxu1 }
 0x3cf   : > { %v1565_v58 = vpop.f32.mrf.mxu0  ;;  %v1499_v60 = vadd.f32 %v1492_v26, %v1426_v57 }
 0x3d0   : > { %v1494_v1 = vpop.f32.mrf.mxu1 }
 0x3d1   : > { %v1567_v61 = vpop.f32.mrf.mxu0  ;;  %v1500_v63 = vadd.f32 %v1494_v1, %v1427_v59  ;;  %v1572_v8 = vadd.f32 %v1565_v58, %v1499_v60 }
 0x3d2   : > { %v1496_v62 = vpop.f32.mrf.mxu1 }
 0x3d3   : > { %v1569_v0 = vpop.f32.mrf.mxu0  ;;  %v1573_v5 = vadd.f32 %v1567_v61, %v1500_v63 }
 0x3d4   : > { %v1497_v2 = vpop.f32.mrf.mxu1 }
 0x3d5   : > { %v1570_v9 = vpop.f32.mrf.mxu0 }
 0x3d6   : > { %v1638_v4 = vpop.f32.mrf.mxu1 }
 0x3d7   : > { %v1645_v10 = vadd.f32 %v1638_v4, %v1572_v8 }
 0x3d8   : > { %v1640_v34 = vpop.f32.mrf.mxu1 }
 0x3d9   : > { %v1653_v39 = vadd.f32 %v1651_v13, %v1645_v10  ;;  %v1646_v17 = vadd.f32 %v1640_v34, %v1573_v5 }
 0x3da   : > { %v1642_v18 = vpop.f32.mrf.mxu1 }
 0x3db   : > { %v1657_v54 = vadd.f32 %v1808_v14, %v1653_v39  ;;  %v1654_v19 = vadd.f32 %v1651_v13, %v1646_v17 }
 0x3dc   : > { %v1643_v20 = vpop.f32.mrf.mxu1 }
 0x3dd   : > { %v1658_v21 = vadd.f32 %v1655_v15, %v1654_v19  ;;  %v1659_v47 = vmax.f32 %v1657_v54, 0.0 }
 0x3df   : > { %v1660_v23 = vmax.f32 %v1658_v21, 0.0 }
 0x3e1   : > { %v1663_v24 = vcombine.low %v1659_v47, %v1660_v23 }
 0x3e3   : > { %1665 = vst [vmem:[%s278_s13] sm:$0xff] %v1663_v24 }
 0x3e4 PF: > { %s17_s24 = sadd.s32 1, %s1815_s24  }
 0x3e5   : > { %p14_p4 = scmp.ge.s32.totalorder %s17_s24, 4  }
 0x3e7   :  { %16 = sbr.rel (!%p14_p4) target bundleno = 1 (0x1), region = 94 }

</bundles_post_ra>
